<compile_context>
chip_gen: v7x
topology: tpu7x:2x2x1
jax: 0.10.0
libtpu: 0.0.40
codegen_flags: <defaults>
</compile_context>

<pallas_src>
import jax
import jax.numpy as jnp
from jax.experimental import pallas as pl
from jax.experimental.pallas import tpu as pltpu

# ---------------------------------------------------------------------------
# Model hyper-parameters (small, consistent with the module's forward)
# ---------------------------------------------------------------------------
D_MODEL = 32
N_HEADS = 4
DH = D_MODEL // N_HEADS          # 8
KV_LATENT = 16
VOCAB = 64
ROPE_BASE = 20000.0
LN_EPS = 1e-5
NEG_INF = -1e30                  # large finite negative; diagonal is always unmasked (past_length=0)

# MXU operand dtype. f32 for exact parity with the f32 reference at these tiny shapes.
# On v6e/v7x set to jnp.bfloat16 (operands only; preferred_element_type keeps f32 accumulation).
# On v5e keep all VPU/EUP (layernorm/RoPE/softmax) math in f32 regardless -- it already is.
MXU_DTYPE = jnp.float32


# ---------------------------------------------------------------------------
# Fused Pallas kernel (single invocation over all B*S rows)
# ---------------------------------------------------------------------------
def _make_kernel(B, S, D, H, dh, L, V, out_w):
    BS = B * S
    # data-slab row offsets
    R_ROPE = BS
    R_MASK = BS + S
    R_LN = BS + S + BS
    # weight-slab column offsets
    C_UPQ = 0
    C_UPKV = 3 * D
    C_DOWN = 5 * D
    C_O = 5 * D + 2 * L + dh
    C_END = C_O + V

    def mm(a, b):
        return jnp.dot(a.astype(MXU_DTYPE), b.astype(MXU_DTYPE),
                       preferred_element_type=jnp.float32)

    def mm_nt(a, b):  # a @ b.T on the MXU without materializing a transpose
        return jax.lax.dot_general(
            a.astype(MXU_DTYPE), b.astype(MXU_DTYPE),
            dimension_numbers=(((1,), (1,)), ((), ())),
            preferred_element_type=jnp.float32)

    def layernorm(v, w, b):
        mu = jnp.mean(v, axis=-1, keepdims=True)
        var = jnp.mean((v - mu) ** 2, axis=-1, keepdims=True)
        return (v - mu) * jax.lax.rsqrt(var + LN_EPS) * w + b

    def kernel(d_ref, w_ref, o_ref):
        x = d_ref[0:BS, 0:D]                             # (BS, D)
        cos = d_ref[R_ROPE:R_ROPE + S, 0:D]              # (S, D)
        sin = d_ref[R_ROPE:R_ROPE + S, D:2 * D]          # (S, D)
        bias = d_ref[R_MASK:R_MASK + BS, 0:BS]           # (BS, BS) additive mask (0 / -1e30)
        ln = d_ref[R_LN:R_LN + 4, 0:L]                   # (4, L) packed LayerNorm params
        ln_kv_w = ln[0:1, :]
        ln_kv_b = ln[1:2, :]
        ln_kr_w = ln[2:3, 0:dh]
        ln_kr_b = ln[3:4, 0:dh]

        # --- fused down projection: [c_q_raw | c_kv_raw | k_r_raw] ----------
        y = mm(x, w_ref[:, C_DOWN:C_O])                  # (BS, 2L+dh)
        c_q = layernorm(y[:, 0:L], ln_kv_w, ln_kv_b)     # (BS, L)
        c_kv = layernorm(y[:, L:2 * L], ln_kv_w, ln_kv_b)
        k_r = layernorm(y[:, 2 * L:2 * L + dh], ln_kr_w, ln_kr_b)   # (BS, dh)

        # --- fused up projections --------------------------------------------
        # TODO(synk): if D/L are scaled up, pad each logical weight block to a 128-lane
        # boundary so these result-column slices become free views instead of lane shifts.
        uq = mm(c_q, w_ref[0:L, C_UPQ:C_UPKV])           # (BS, 3D)
        ukv = mm(c_kv, w_ref[0:L, C_UPKV:C_DOWN])        # (BS, 2D)
        q_c = uq[:, 0:D]
        # RoPE: rotate-half already folded into the 3rd weight block in the wrapper.
        cos_bs = jnp.tile(cos, (B, 1))                   # (BS, D) batch broadcast in-kernel
        sin_bs = jnp.tile(sin, (B, 1))
        q_r = uq[:, D:2 * D] * cos_bs + uq[:, 2 * D:3 * D] * sin_bs
        k_c = ukv[:, 0:D]
        v_c = ukv[:, D:2 * D]

        # --- attention: flat (BS, BS) matmuls, mask folds causal + batch-block-diagonal ---
        scale = 1.0 / jnp.sqrt(jnp.float32(2 * dh))
        o_heads = []
        # TODO(synk): for large S, replace this full (BS,BS) score materialization with a
        # KV-tiled online-softmax (flash-style) loop; size tiles against 64 MiB VMEM on v7x.
        for h in range(H):                               # H is tiny & static
            sl = slice(h * dh, (h + 1) * dh)
            s_h = (mm_nt(q_c[:, sl], k_c[:, sl])
                   + mm_nt(q_r[:, sl], k_r)) * scale + bias          # (BS, BS)
            m = jnp.max(s_h, axis=-1, keepdims=True)
            p = jnp.exp(s_h - m)
            attn = p * pl.reciprocal(jnp.sum(p, axis=-1, keepdims=True), approx=True)
            o_heads.append(mm(attn, v_c[:, sl]))                     # (BS, dh)

        # single output projection after the head loop (K = D, one MXU push)
        o_full = jnp.concatenate(o_heads, axis=-1)                   # (BS, D)
        out_v = mm(o_full, w_ref[:, C_O:C_END])                      # (BS, V)

        # single lane-dense output slab: [out | c_kv | k_r | zero pad] -> one unmasked store
        parts = [out_v, c_kv, k_r]
        tail = out_w - (V + L + dh)
        if tail:
            parts.append(jnp.zeros((BS, tail), jnp.float32))
        o_ref[...] = jnp.concatenate(parts, axis=-1)

    return kernel


# ---------------------------------------------------------------------------
# Wrapper
# ---------------------------------------------------------------------------
def rope_cos_sin(seq_len, dim, base=ROPE_BASE):
    half = dim // 2
    inv_freq = 1.0 / (base ** (jnp.arange(half, dtype=jnp.float32) / half))
    pos = jnp.arange(seq_len, dtype=jnp.float32)
    ang = pos[:, None] * inv_freq[None, :]                  # (S, D/2)
    cos = jnp.concatenate([jnp.cos(ang), jnp.cos(ang)], axis=-1)
    sin = jnp.concatenate([jnp.sin(ang), jnp.sin(ang)], axis=-1)
    return cos, sin


def init_params(key):
    ks = jax.random.split(key, 12)
    scale = 0.05

    def w(k, shape):  # stored as (in, out)
        return jax.random.normal(k, shape, dtype=jnp.float32) * scale

    return dict(
        w_dq=w(ks[0], (D_MODEL, KV_LATENT)),
        w_dkv=w(ks[1], (D_MODEL, KV_LATENT)),
        w_uk=w(ks[2], (KV_LATENT, D_MODEL)),
        w_uv=w(ks[3], (KV_LATENT, D_MODEL)),
        w_uq=w(ks[4], (KV_LATENT, D_MODEL)),
        w_qr=w(ks[5], (KV_LATENT, D_MODEL)),
        w_kr=w(ks[6], (D_MODEL, DH)),
        w_o=w(ks[7], (D_MODEL, VOCAB)),
        ln_kv_w=1.0 + 0.1 * jax.random.normal(ks[8], (1, KV_LATENT), dtype=jnp.float32),
        ln_kv_b=0.1 * jax.random.normal(ks[9], (1, KV_LATENT), dtype=jnp.float32),
        ln_kr_w=1.0 + 0.1 * jax.random.normal(ks[10], (1, DH), dtype=jnp.float32),
        ln_kr_b=0.1 * jax.random.normal(ks[11], (1, DH), dtype=jnp.float32),
    )


def rope_attention_forward(x, params):
    B, S, D = x.shape
    assert D == D_MODEL
    H, dh, L, V = N_HEADS, DH, KV_LATENT, VOCAB
    BS = B * S
    p = params
    half = D // 2

    # --- wrapper-side (cheap XLA) packing; weight slab could be pre-packed once -----------
    w_qr_rot = jnp.concatenate([-p["w_qr"][:, half:], p["w_qr"][:, :half]], axis=1)
    w_upq = jnp.concatenate([p["w_uq"], p["w_qr"], w_qr_rot], axis=1)        # (L, 3D)
    w_upkv = jnp.concatenate([p["w_uk"], p["w_uv"]], axis=1)                 # (L, 2D)
    w_up = jnp.concatenate([w_upq, w_upkv], axis=1)                          # (L, 5D)
    w_up = jnp.zeros((D, 5 * D), jnp.float32).at[:L, :].set(w_up)            # pad rows -> D
    w_down = jnp.concatenate([p["w_dq"], p["w_dkv"], p["w_kr"]], axis=1)     # (D, 2L+dh)
    wslab = jnp.concatenate([w_up, w_down, p["w_o"]], axis=1)                # (D, 5D+2L+dh+V)

    cos, sin = rope_cos_sin(S, D)

    ln = jnp.zeros((4, L), jnp.float32)
    ln = ln.at[0].set(p["ln_kv_w"][0])
    ln = ln.at[1].set(p["ln_kv_b"][0])
    ln = ln.at[2, :dh].set(p["ln_kr_w"][0])
    ln = ln.at[3, :dh].set(p["ln_kr_b"][0])

    # causal + same-batch (block-diagonal) additive mask over flattened BS rows
    ri = jnp.arange(BS)
    b_idx = ri // S
    s_idx = ri % S
    allowed = (b_idx[:, None] == b_idx[None, :]) & (s_idx[None, :] <= s_idx[:, None])
    mask_bias = jnp.where(allowed, 0.0, NEG_INF).astype(jnp.float32)         # (BS, BS)

    # single packed data slab: [x | rope(cos,sin) | mask | ln]
    slab_w = max(2 * D, BS)
    slab_r = BS + S + BS + 4
    data = jnp.zeros((slab_r, slab_w), jnp.float32)
    data = data.at[0:BS, 0:D].set(x.reshape(BS, D))
    data = data.at[BS:BS + S, 0:D].set(cos)
    data = data.at[BS:BS + S, D:2 * D].set(sin)
    data = data.at[BS + S:BS + S + BS, 0:BS].set(mask_bias)
    data = data.at[BS + S + BS:, 0:L].set(ln)

    out_w = pl.cdiv(V + L + dh, 128) * 128                                   # lane-dense output
    kernel = _make_kernel(B, S, D, H, dh, L, V, out_w)

    # Rough cost hint for XLA's scheduler.
    flops = (2 * BS * D * (2 * L + dh) + 2 * BS * L * 5 * D
             + H * (2 * BS * BS * 2 * dh + 2 * BS * BS * dh)
             + 2 * BS * D * V + 10 * BS * D)
    transc = H * BS * BS + H * BS
    nbytes = 4 * (data.size + wslab.size + BS * out_w)
    cost = pl.CostEstimate(flops=flops, transcendentals=transc, bytes_accessed=nbytes)

    out_slab = pl.pallas_call(
        kernel,
        out_shape=jax.ShapeDtypeStruct((BS, out_w), jnp.float32),
        grid=(1,),
        in_specs=[pl.BlockSpec(data.shape, lambda i: (0, 0)),
                  pl.BlockSpec(wslab.shape, lambda i: (0, 0))],
        out_specs=pl.BlockSpec((BS, out_w), lambda i: (0, 0)),
        # TODO(synk): when B/S grow, add a "parallel" grid axis (query tiles / batch) so both
        # v7x TensorCores are used, and set vmem_limit_bytes budgeted against 64 MiB (v7x).
        compiler_params=pltpu.CompilerParams(dimension_semantics=("arbitrary",)),
        cost_estimate=cost,
    )(data, wslab)

    out = out_slab[:, :V].reshape(B, S, V)
    c_kv = out_slab[:, V:V + L].reshape(B, S, L)
    k_r_base = out_slab[:, V + L:V + L + dh].reshape(B, S, dh)
    # head broadcast done outside the kernel (free metadata; avoids H masked 8-lane stores)
    k_r = jnp.broadcast_to(k_r_base[:, :, None, :], (B, S, H, dh))
    return out, c_kv, k_r


# ---------------------------------------------------------------------------
# Pure-JAX reference (mirrors the PyTorch forward) for verification
# ---------------------------------------------------------------------------
def reference_forward(x, p):
    B, S, D = x.shape
    cos, sin = rope_cos_sin(S, D)

    def ln(v, w, b):
        mu = v.mean(-1, keepdims=True)
        var = ((v - mu) ** 2).mean(-1, keepdims=True)
        return (v - mu) / jnp.sqrt(var + LN_EPS) * w[0] + b[0]

    c_q = ln(x @ p["w_dq"], p["ln_kv_w"], p["ln_kv_b"])
    c_kv = ln(x @ p["w_dkv"], p["ln_kv_w"], p["ln_kv_b"])
    q_c = (c_q @ p["w_uq"]).reshape(B, S, N_HEADS, DH)
    k_c = (c_kv @ p["w_uk"]).reshape(B, S, N_HEADS, DH)
    v_c = (c_kv @ p["w_uv"]).reshape(B, S, N_HEADS, DH)
    qr = c_q @ p["w_qr"]
    half = D // 2
    qr_rot = jnp.concatenate([-qr[..., half:], qr[..., :half]], axis=-1)
    q_r = (qr * cos + qr_rot * sin).reshape(B, S, N_HEADS, DH)
    k_r = ln(x @ p["w_kr"], p["ln_kr_w"], p["ln_kr_b"])               # (B,S,dh)
    k_r_st = jnp.broadcast_to(k_r[:, :, None, :], (B, S, N_HEADS, DH))

    q = jnp.concatenate([q_c, q_r], axis=-1)
    k = jnp.concatenate([k_c, k_r_st], axis=-1)
    scores = jnp.einsum("bshd,bthd->bhst", q, k) / jnp.sqrt(jnp.float32(2 * DH))
    mask = jnp.tril(jnp.ones((S, S), bool))
    scores = jnp.where(mask[None, None], scores, -jnp.inf)
    attn = jax.nn.softmax(scores, axis=-1)
    out_h = jnp.einsum("bhst,bthd->bshd", attn, v_c).reshape(B, S, D)
    out = out_h @ p["w_o"]
    return out, c_kv, k_r_st


# ---------------------------------------------------------------------------
if __name__ == "__main__":
    key = jax.random.PRNGKey(0)
    k_x, k_p = jax.random.split(key)
    B, S = 2, 8
    x = jax.random.normal(k_x, (B, S, D_MODEL), dtype=jnp.float32)
    params = init_params(k_p)

    out, c_kv, k_r = rope_attention_forward(x, params)
    jax.block_until_ready((out, c_kv, k_r))

    ref_out, ref_c_kv, ref_k_r = reference_forward(x, params)
    assert jnp.allclose(out, ref_out, atol=1e-3, rtol=1e-3)
    assert jnp.allclose(c_kv, ref_c_kv, atol=1e-3, rtol=1e-3)
    assert jnp.allclose(k_r, ref_k_r, atol=1e-3, rtol=1e-3)

    print("KERNEL_OK")
</pallas_src>

<mosaic_0001>
module attributes {stable_mosaic.version = 11 : i64} {
  func.func @kernel(%arg0: i32, %arg1: memref<44x64xf32, #tpu.memory_space<vmem>>, %arg2: memref<32x264xf32, #tpu.memory_space<vmem>>, %arg3: memref<16x128xf32, #tpu.memory_space<vmem>>) attributes {dimension_semantics = [#tpu.dimension_semantics<arbitrary>], iteration_bounds = array<i64: 1>, scalar_prefetch = 0 : i64, scratch_operands = 0 : i64, tpu.core_type = #tpu.core_type<tc>, window_params = [{pipeline_mode = #tpu.pipeline_mode<synchronous>, transform_indices = @transform_0, window_bounds = array<i64: 44, 64>}, {pipeline_mode = #tpu.pipeline_mode<synchronous>, transform_indices = @transform_1, window_bounds = array<i64: 32, 264>}, {pipeline_mode = #tpu.pipeline_mode<synchronous>, transform_indices = @transform_2, window_bounds = array<i64: 16, 128>}]} {
    %c0 = arith.constant 0 : index
    %c0_0 = arith.constant 0 : index
    %0 = vector.load %arg1[%c0, %c0_0] : memref<44x64xf32, #tpu.memory_space<vmem>>, vector<16x32xf32>
    %c16 = arith.constant 16 : index
    %c0_1 = arith.constant 0 : index
    %1 = vector.load %arg1[%c16, %c0_1] : memref<44x64xf32, #tpu.memory_space<vmem>>, vector<8x32xf32>
    %c16_2 = arith.constant 16 : index
    %c32 = arith.constant 32 : index
    %2 = vector.load %arg1[%c16_2, %c32] : memref<44x64xf32, #tpu.memory_space<vmem>>, vector<8x32xf32>
    %c24 = arith.constant 24 : index
    %c0_3 = arith.constant 0 : index
    %3 = vector.load %arg1[%c24, %c0_3] : memref<44x64xf32, #tpu.memory_space<vmem>>, vector<16x16xf32>
    %c40 = arith.constant 40 : index
    %c0_4 = arith.constant 0 : index
    %4 = vector.load %arg1[%c40, %c0_4] : memref<44x64xf32, #tpu.memory_space<vmem>>, vector<4x16xf32>
    %5 = vector.extract_strided_slice %4 {offsets = [0, 0], sizes = [1, 16], strides = [1, 1]} : vector<4x16xf32> to vector<1x16xf32>
    %6 = vector.extract_strided_slice %4 {offsets = [1, 0], sizes = [1, 16], strides = [1, 1]} : vector<4x16xf32> to vector<1x16xf32>
    %7 = vector.extract_strided_slice %4 {offsets = [2, 0], sizes = [1, 8], strides = [1, 1]} : vector<4x16xf32> to vector<1x8xf32>
    %8 = vector.extract_strided_slice %4 {offsets = [3, 0], sizes = [1, 8], strides = [1, 1]} : vector<4x16xf32> to vector<1x8xf32>
    %c0_5 = arith.constant 0 : index
    %c160 = arith.constant 160 : index
    %9 = vector.load %arg2[%c0_5, %c160] : memref<32x264xf32, #tpu.memory_space<vmem>>, vector<32x40xf32>
    %cst = arith.constant dense<0.000000e+00> : vector<16x40xf32>
    %10 = tpu.matmul %0, %9, %cst {dimension_numbers = #tpu.dot_dimension_numbers<[1], [0], [0], [1], [0, 0, 1, 1], [], []>} : vector<16x32xf32>, vector<32x40xf32>, vector<16x40xf32> -> vector<16x40xf32>
    %11 = vector.extract_strided_slice %10 {offsets = [0, 0], sizes = [16, 16], strides = [1, 1]} : vector<16x40xf32> to vector<16x16xf32>
    %cst_6 = arith.constant dense<0.000000e+00> : vector<16xf32>
    %12 = vector.multi_reduction <add>, %11, %cst_6 [1] : vector<16x16xf32> to vector<16xf32>
    %13 = vector.shape_cast %12 : vector<16xf32> to vector<16x1xf32>
    %cst_7 = arith.constant 1.600000e+01 : f32
    %14 = vector.broadcast %cst_7 : f32 to vector<16x1xf32>
    %15 = arith.divf %13, %14 : vector<16x1xf32>
    %16 = vector.broadcast %15 : vector<16x1xf32> to vector<16x16xf32>
    %17 = arith.subf %11, %16 : vector<16x16xf32>
    %18 = arith.mulf %17, %17 : vector<16x16xf32>
    %cst_8 = arith.constant dense<0.000000e+00> : vector<16xf32>
    %19 = vector.multi_reduction <add>, %18, %cst_8 [1] : vector<16x16xf32> to vector<16xf32>
    %20 = vector.shape_cast %19 : vector<16xf32> to vector<16x1xf32>
    %cst_9 = arith.constant 1.600000e+01 : f32
    %21 = vector.broadcast %cst_9 : f32 to vector<16x1xf32>
    %22 = arith.divf %20, %21 : vector<16x1xf32>
    %23 = vector.broadcast %15 : vector<16x1xf32> to vector<16x16xf32>
    %24 = arith.subf %11, %23 : vector<16x16xf32>
    %cst_10 = arith.constant 9.99999974E-6 : f32
    %25 = vector.broadcast %cst_10 : f32 to vector<16x1xf32>
    %26 = arith.addf %22, %25 : vector<16x1xf32>
    %27 = math.rsqrt %26 : vector<16x1xf32>
    %28 = vector.broadcast %27 : vector<16x1xf32> to vector<16x16xf32>
    %29 = arith.mulf %24, %28 : vector<16x16xf32>
    %30 = vector.broadcast %5 : vector<1x16xf32> to vector<16x16xf32>
    %31 = arith.mulf %29, %30 : vector<16x16xf32>
    %32 = vector.broadcast %6 : vector<1x16xf32> to vector<16x16xf32>
    %33 = arith.addf %31, %32 : vector<16x16xf32>
    %34 = vector.extract_strided_slice %10 {offsets = [0, 16], sizes = [16, 16], strides = [1, 1]} : vector<16x40xf32> to vector<16x16xf32>
    %cst_11 = arith.constant dense<0.000000e+00> : vector<16xf32>
    %35 = vector.multi_reduction <add>, %34, %cst_11 [1] : vector<16x16xf32> to vector<16xf32>
    %36 = vector.shape_cast %35 : vector<16xf32> to vector<16x1xf32>
    %cst_12 = arith.constant 1.600000e+01 : f32
    %37 = vector.broadcast %cst_12 : f32 to vector<16x1xf32>
    %38 = arith.divf %36, %37 : vector<16x1xf32>
    %39 = vector.broadcast %38 : vector<16x1xf32> to vector<16x16xf32>
    %40 = arith.subf %34, %39 : vector<16x16xf32>
    %41 = arith.mulf %40, %40 : vector<16x16xf32>
    %cst_13 = arith.constant dense<0.000000e+00> : vector<16xf32>
    %42 = vector.multi_reduction <add>, %41, %cst_13 [1] : vector<16x16xf32> to vector<16xf32>
    %43 = vector.shape_cast %42 : vector<16xf32> to vector<16x1xf32>
    %cst_14 = arith.constant 1.600000e+01 : f32
    %44 = vector.broadcast %cst_14 : f32 to vector<16x1xf32>
    %45 = arith.divf %43, %44 : vector<16x1xf32>
    %46 = vector.broadcast %38 : vector<16x1xf32> to vector<16x16xf32>
    %47 = arith.subf %34, %46 : vector<16x16xf32>
    %cst_15 = arith.constant 9.99999974E-6 : f32
    %48 = vector.broadcast %cst_15 : f32 to vector<16x1xf32>
    %49 = arith.addf %45, %48 : vector<16x1xf32>
    %50 = math.rsqrt %49 : vector<16x1xf32>
    %51 = vector.broadcast %50 : vector<16x1xf32> to vector<16x16xf32>
    %52 = arith.mulf %47, %51 : vector<16x16xf32>
    %53 = vector.broadcast %5 : vector<1x16xf32> to vector<16x16xf32>
    %54 = arith.mulf %52, %53 : vector<16x16xf32>
    %55 = vector.broadcast %6 : vector<1x16xf32> to vector<16x16xf32>
    %56 = arith.addf %54, %55 : vector<16x16xf32>
    %57 = vector.extract_strided_slice %10 {offsets = [0, 32], sizes = [16, 8], strides = [1, 1]} : vector<16x40xf32> to vector<16x8xf32>
    %cst_16 = arith.constant dense<0.000000e+00> : vector<16xf32>
    %58 = vector.multi_reduction <add>, %57, %cst_16 [1] : vector<16x8xf32> to vector<16xf32>
    %59 = vector.shape_cast %58 : vector<16xf32> to vector<16x1xf32>
    %cst_17 = arith.constant 8.000000e+00 : f32
    %60 = vector.broadcast %cst_17 : f32 to vector<16x1xf32>
    %61 = arith.divf %59, %60 : vector<16x1xf32>
    %62 = vector.broadcast %61 : vector<16x1xf32> to vector<16x8xf32>
    %63 = arith.subf %57, %62 : vector<16x8xf32>
    %64 = arith.mulf %63, %63 : vector<16x8xf32>
    %cst_18 = arith.constant dense<0.000000e+00> : vector<16xf32>
    %65 = vector.multi_reduction <add>, %64, %cst_18 [1] : vector<16x8xf32> to vector<16xf32>
    %66 = vector.shape_cast %65 : vector<16xf32> to vector<16x1xf32>
    %cst_19 = arith.constant 8.000000e+00 : f32
    %67 = vector.broadcast %cst_19 : f32 to vector<16x1xf32>
    %68 = arith.divf %66, %67 : vector<16x1xf32>
    %69 = vector.broadcast %61 : vector<16x1xf32> to vector<16x8xf32>
    %70 = arith.subf %57, %69 : vector<16x8xf32>
    %cst_20 = arith.constant 9.99999974E-6 : f32
    %71 = vector.broadcast %cst_20 : f32 to vector<16x1xf32>
    %72 = arith.addf %68, %71 : vector<16x1xf32>
    %73 = math.rsqrt %72 : vector<16x1xf32>
    %74 = vector.broadcast %73 : vector<16x1xf32> to vector<16x8xf32>
    %75 = arith.mulf %70, %74 : vector<16x8xf32>
    %76 = vector.broadcast %7 : vector<1x8xf32> to vector<16x8xf32>
    %77 = arith.mulf %75, %76 : vector<16x8xf32>
    %78 = vector.broadcast %8 : vector<1x8xf32> to vector<16x8xf32>
    %79 = arith.addf %77, %78 : vector<16x8xf32>
    %c0_21 = arith.constant 0 : index
    %c0_22 = arith.constant 0 : index
    %80 = vector.load %arg2[%c0_21, %c0_22] : memref<32x264xf32, #tpu.memory_space<vmem>>, vector<16x96xf32>
    %cst_23 = arith.constant dense<0.000000e+00> : vector<16x96xf32>
    %81 = tpu.matmul %33, %80, %cst_23 {dimension_numbers = #tpu.dot_dimension_numbers<[1], [0], [0], [1], [0, 0, 1, 1], [], []>} : vector<16x16xf32>, vector<16x96xf32>, vector<16x96xf32> -> vector<16x96xf32>
    %c0_24 = arith.constant 0 : index
    %c96 = arith.constant 96 : index
    %82 = vector.load %arg2[%c0_24, %c96] : memref<32x264xf32, #tpu.memory_space<vmem>>, vector<16x64xf32>
    %cst_25 = arith.constant dense<0.000000e+00> : vector<16x64xf32>
    %83 = tpu.matmul %56, %82, %cst_25 {dimension_numbers = #tpu.dot_dimension_numbers<[1], [0], [0], [1], [0, 0, 1, 1], [], []>} : vector<16x16xf32>, vector<16x64xf32>, vector<16x64xf32> -> vector<16x64xf32>
    %84 = vector.extract_strided_slice %81 {offsets = [0, 0], sizes = [16, 32], strides = [1, 1]} : vector<16x96xf32> to vector<16x32xf32>
    %85 = tpu.concatenate %1, %1 in 0 : vector<8x32xf32>, vector<8x32xf32> -> vector<16x32xf32>
    %86 = tpu.concatenate %2, %2 in 0 : vector<8x32xf32>, vector<8x32xf32> -> vector<16x32xf32>
    %87 = vector.extract_strided_slice %81 {offsets = [0, 32], sizes = [16, 32], strides = [1, 1]} : vector<16x96xf32> to vector<16x32xf32>
    %88 = arith.mulf %87, %85 : vector<16x32xf32>
    %89 = vector.extract_strided_slice %81 {offsets = [0, 64], sizes = [16, 32], strides = [1, 1]} : vector<16x96xf32> to vector<16x32xf32>
    %90 = arith.mulf %89, %86 : vector<16x32xf32>
    %91 = arith.addf %88, %90 : vector<16x32xf32>
    %92 = vector.extract_strided_slice %83 {offsets = [0, 0], sizes = [16, 32], strides = [1, 1]} : vector<16x64xf32> to vector<16x32xf32>
    %93 = vector.extract_strided_slice %83 {offsets = [0, 32], sizes = [16, 32], strides = [1, 1]} : vector<16x64xf32> to vector<16x32xf32>
    %cst_26 = arith.constant 1.600000e+01 : f32
    %94 = math.sqrt %cst_26 : f32
    %cst_27 = arith.constant 1.000000e+00 : f32
    %95 = arith.divf %cst_27, %94 : f32
    %96 = vector.extract_strided_slice %84 {offsets = [0, 0], sizes = [16, 8], strides = [1, 1]} : vector<16x32xf32> to vector<16x8xf32>
    %97 = vector.extract_strided_slice %92 {offsets = [0, 0], sizes = [16, 8], strides = [1, 1]} : vector<16x32xf32> to vector<16x8xf32>
    %cst_28 = arith.constant dense<0.000000e+00> : vector<16x16xf32>
    %98 = tpu.matmul %96, %97, %cst_28 {dimension_numbers = #tpu.dot_dimension_numbers<[1], [1], [0], [0], [0, 0, 1, 0], [], []>} : vector<16x8xf32>, vector<16x8xf32>, vector<16x16xf32> -> vector<16x16xf32>
    %99 = vector.extract_strided_slice %91 {offsets = [0, 0], sizes = [16, 8], strides = [1, 1]} : vector<16x32xf32> to vector<16x8xf32>
    %cst_29 = arith.constant dense<0.000000e+00> : vector<16x16xf32>
    %100 = tpu.matmul %99, %79, %cst_29 {dimension_numbers = #tpu.dot_dimension_numbers<[1], [1], [0], [0], [0, 0, 1, 0], [], []>} : vector<16x8xf32>, vector<16x8xf32>, vector<16x16xf32> -> vector<16x16xf32>
    %101 = arith.addf %98, %100 : vector<16x16xf32>
    %102 = vector.broadcast %95 : f32 to vector<16x16xf32>
    %103 = arith.mulf %101, %102 : vector<16x16xf32>
    %104 = arith.addf %103, %3 : vector<16x16xf32>
    %cst_30 = arith.constant dense<0xFF800000> : vector<16xf32>
    %105 = vector.multi_reduction <maximumf>, %104, %cst_30 [1] : vector<16x16xf32> to vector<16xf32>
    %106 = vector.shape_cast %105 : vector<16xf32> to vector<16x1xf32>
    %107 = vector.broadcast %106 : vector<16x1xf32> to vector<16x16xf32>
    %108 = arith.subf %104, %107 : vector<16x16xf32>
    %109 = math.exp %108 : vector<16x16xf32>
    %cst_31 = arith.constant dense<0.000000e+00> : vector<16xf32>
    %110 = vector.multi_reduction <add>, %109, %cst_31 [1] : vector<16x16xf32> to vector<16xf32>
    %111 = vector.shape_cast %110 : vector<16xf32> to vector<16x1xf32>
    %112 = tpu.reciprocal %111 {approx = true} : vector<16x1xf32> -> vector<16x1xf32>
    %113 = vector.broadcast %112 : vector<16x1xf32> to vector<16x16xf32>
    %114 = arith.mulf %109, %113 : vector<16x16xf32>
    %115 = vector.extract_strided_slice %93 {offsets = [0, 0], sizes = [16, 8], strides = [1, 1]} : vector<16x32xf32> to vector<16x8xf32>
    %cst_32 = arith.constant dense<0.000000e+00> : vector<16x8xf32>
    %116 = tpu.matmul %114, %115, %cst_32 {dimension_numbers = #tpu.dot_dimension_numbers<[1], [0], [0], [1], [0, 0, 1, 1], [], []>} : vector<16x16xf32>, vector<16x8xf32>, vector<16x8xf32> -> vector<16x8xf32>
    %117 = vector.extract_strided_slice %84 {offsets = [0, 8], sizes = [16, 8], strides = [1, 1]} : vector<16x32xf32> to vector<16x8xf32>
    %118 = vector.extract_strided_slice %92 {offsets = [0, 8], sizes = [16, 8], strides = [1, 1]} : vector<16x32xf32> to vector<16x8xf32>
    %cst_33 = arith.constant dense<0.000000e+00> : vector<16x16xf32>
    %119 = tpu.matmul %117, %118, %cst_33 {dimension_numbers = #tpu.dot_dimension_numbers<[1], [1], [0], [0], [0, 0, 1, 0], [], []>} : vector<16x8xf32>, vector<16x8xf32>, vector<16x16xf32> -> vector<16x16xf32>
    %120 = vector.extract_strided_slice %91 {offsets = [0, 8], sizes = [16, 8], strides = [1, 1]} : vector<16x32xf32> to vector<16x8xf32>
    %cst_34 = arith.constant dense<0.000000e+00> : vector<16x16xf32>
    %121 = tpu.matmul %120, %79, %cst_34 {dimension_numbers = #tpu.dot_dimension_numbers<[1], [1], [0], [0], [0, 0, 1, 0], [], []>} : vector<16x8xf32>, vector<16x8xf32>, vector<16x16xf32> -> vector<16x16xf32>
    %122 = arith.addf %119, %121 : vector<16x16xf32>
    %123 = vector.broadcast %95 : f32 to vector<16x16xf32>
    %124 = arith.mulf %122, %123 : vector<16x16xf32>
    %125 = arith.addf %124, %3 : vector<16x16xf32>
    %cst_35 = arith.constant dense<0xFF800000> : vector<16xf32>
    %126 = vector.multi_reduction <maximumf>, %125, %cst_35 [1] : vector<16x16xf32> to vector<16xf32>
    %127 = vector.shape_cast %126 : vector<16xf32> to vector<16x1xf32>
    %128 = vector.broadcast %127 : vector<16x1xf32> to vector<16x16xf32>
    %129 = arith.subf %125, %128 : vector<16x16xf32>
    %130 = math.exp %129 : vector<16x16xf32>
    %cst_36 = arith.constant dense<0.000000e+00> : vector<16xf32>
    %131 = vector.multi_reduction <add>, %130, %cst_36 [1] : vector<16x16xf32> to vector<16xf32>
    %132 = vector.shape_cast %131 : vector<16xf32> to vector<16x1xf32>
    %133 = tpu.reciprocal %132 {approx = true} : vector<16x1xf32> -> vector<16x1xf32>
    %134 = vector.broadcast %133 : vector<16x1xf32> to vector<16x16xf32>
    %135 = arith.mulf %130, %134 : vector<16x16xf32>
    %136 = vector.extract_strided_slice %93 {offsets = [0, 8], sizes = [16, 8], strides = [1, 1]} : vector<16x32xf32> to vector<16x8xf32>
    %cst_37 = arith.constant dense<0.000000e+00> : vector<16x8xf32>
    %137 = tpu.matmul %135, %136, %cst_37 {dimension_numbers = #tpu.dot_dimension_numbers<[1], [0], [0], [1], [0, 0, 1, 1], [], []>} : vector<16x16xf32>, vector<16x8xf32>, vector<16x8xf32> -> vector<16x8xf32>
    %138 = vector.extract_strided_slice %84 {offsets = [0, 16], sizes = [16, 8], strides = [1, 1]} : vector<16x32xf32> to vector<16x8xf32>
    %139 = vector.extract_strided_slice %92 {offsets = [0, 16], sizes = [16, 8], strides = [1, 1]} : vector<16x32xf32> to vector<16x8xf32>
    %cst_38 = arith.constant dense<0.000000e+00> : vector<16x16xf32>
    %140 = tpu.matmul %138, %139, %cst_38 {dimension_numbers = #tpu.dot_dimension_numbers<[1], [1], [0], [0], [0, 0, 1, 0], [], []>} : vector<16x8xf32>, vector<16x8xf32>, vector<16x16xf32> -> vector<16x16xf32>
    %141 = vector.extract_strided_slice %91 {offsets = [0, 16], sizes = [16, 8], strides = [1, 1]} : vector<16x32xf32> to vector<16x8xf32>
    %cst_39 = arith.constant dense<0.000000e+00> : vector<16x16xf32>
    %142 = tpu.matmul %141, %79, %cst_39 {dimension_numbers = #tpu.dot_dimension_numbers<[1], [1], [0], [0], [0, 0, 1, 0], [], []>} : vector<16x8xf32>, vector<16x8xf32>, vector<16x16xf32> -> vector<16x16xf32>
    %143 = arith.addf %140, %142 : vector<16x16xf32>
    %144 = vector.broadcast %95 : f32 to vector<16x16xf32>
    %145 = arith.mulf %143, %144 : vector<16x16xf32>
    %146 = arith.addf %145, %3 : vector<16x16xf32>
    %cst_40 = arith.constant dense<0xFF800000> : vector<16xf32>
    %147 = vector.multi_reduction <maximumf>, %146, %cst_40 [1] : vector<16x16xf32> to vector<16xf32>
    %148 = vector.shape_cast %147 : vector<16xf32> to vector<16x1xf32>
    %149 = vector.broadcast %148 : vector<16x1xf32> to vector<16x16xf32>
    %150 = arith.subf %146, %149 : vector<16x16xf32>
    %151 = math.exp %150 : vector<16x16xf32>
    %cst_41 = arith.constant dense<0.000000e+00> : vector<16xf32>
    %152 = vector.multi_reduction <add>, %151, %cst_41 [1] : vector<16x16xf32> to vector<16xf32>
    %153 = vector.shape_cast %152 : vector<16xf32> to vector<16x1xf32>
    %154 = tpu.reciprocal %153 {approx = true} : vector<16x1xf32> -> vector<16x1xf32>
    %155 = vector.broadcast %154 : vector<16x1xf32> to vector<16x16xf32>
    %156 = arith.mulf %151, %155 : vector<16x16xf32>
    %157 = vector.extract_strided_slice %93 {offsets = [0, 16], sizes = [16, 8], strides = [1, 1]} : vector<16x32xf32> to vector<16x8xf32>
    %cst_42 = arith.constant dense<0.000000e+00> : vector<16x8xf32>
    %158 = tpu.matmul %156, %157, %cst_42 {dimension_numbers = #tpu.dot_dimension_numbers<[1], [0], [0], [1], [0, 0, 1, 1], [], []>} : vector<16x16xf32>, vector<16x8xf32>, vector<16x8xf32> -> vector<16x8xf32>
    %159 = vector.extract_strided_slice %84 {offsets = [0, 24], sizes = [16, 8], strides = [1, 1]} : vector<16x32xf32> to vector<16x8xf32>
    %160 = vector.extract_strided_slice %92 {offsets = [0, 24], sizes = [16, 8], strides = [1, 1]} : vector<16x32xf32> to vector<16x8xf32>
    %cst_43 = arith.constant dense<0.000000e+00> : vector<16x16xf32>
    %161 = tpu.matmul %159, %160, %cst_43 {dimension_numbers = #tpu.dot_dimension_numbers<[1], [1], [0], [0], [0, 0, 1, 0], [], []>} : vector<16x8xf32>, vector<16x8xf32>, vector<16x16xf32> -> vector<16x16xf32>
    %162 = vector.extract_strided_slice %91 {offsets = [0, 24], sizes = [16, 8], strides = [1, 1]} : vector<16x32xf32> to vector<16x8xf32>
    %cst_44 = arith.constant dense<0.000000e+00> : vector<16x16xf32>
    %163 = tpu.matmul %162, %79, %cst_44 {dimension_numbers = #tpu.dot_dimension_numbers<[1], [1], [0], [0], [0, 0, 1, 0], [], []>} : vector<16x8xf32>, vector<16x8xf32>, vector<16x16xf32> -> vector<16x16xf32>
    %164 = arith.addf %161, %163 : vector<16x16xf32>
    %165 = vector.broadcast %95 : f32 to vector<16x16xf32>
    %166 = arith.mulf %164, %165 : vector<16x16xf32>
    %167 = arith.addf %166, %3 : vector<16x16xf32>
    %cst_45 = arith.constant dense<0xFF800000> : vector<16xf32>
    %168 = vector.multi_reduction <maximumf>, %167, %cst_45 [1] : vector<16x16xf32> to vector<16xf32>
    %169 = vector.shape_cast %168 : vector<16xf32> to vector<16x1xf32>
    %170 = vector.broadcast %169 : vector<16x1xf32> to vector<16x16xf32>
    %171 = arith.subf %167, %170 : vector<16x16xf32>
    %172 = math.exp %171 : vector<16x16xf32>
    %cst_46 = arith.constant dense<0.000000e+00> : vector<16xf32>
    %173 = vector.multi_reduction <add>, %172, %cst_46 [1] : vector<16x16xf32> to vector<16xf32>
    %174 = vector.shape_cast %173 : vector<16xf32> to vector<16x1xf32>
    %175 = tpu.reciprocal %174 {approx = true} : vector<16x1xf32> -> vector<16x1xf32>
    %176 = vector.broadcast %175 : vector<16x1xf32> to vector<16x16xf32>
    %177 = arith.mulf %172, %176 : vector<16x16xf32>
    %178 = vector.extract_strided_slice %93 {offsets = [0, 24], sizes = [16, 8], strides = [1, 1]} : vector<16x32xf32> to vector<16x8xf32>
    %cst_47 = arith.constant dense<0.000000e+00> : vector<16x8xf32>
    %179 = tpu.matmul %177, %178, %cst_47 {dimension_numbers = #tpu.dot_dimension_numbers<[1], [0], [0], [1], [0, 0, 1, 1], [], []>} : vector<16x16xf32>, vector<16x8xf32>, vector<16x8xf32> -> vector<16x8xf32>
    %180 = tpu.concatenate %116, %137, %158, %179 in 1 : vector<16x8xf32>, vector<16x8xf32>, vector<16x8xf32>, vector<16x8xf32> -> vector<16x32xf32>
    %c0_48 = arith.constant 0 : index
    %c200 = arith.constant 200 : index
    %181 = vector.load %arg2[%c0_48, %c200] : memref<32x264xf32, #tpu.memory_space<vmem>>, vector<32x64xf32>
    %cst_49 = arith.constant dense<0.000000e+00> : vector<16x64xf32>
    %182 = tpu.matmul %180, %181, %cst_49 {dimension_numbers = #tpu.dot_dimension_numbers<[1], [0], [0], [1], [0, 0, 1, 1], [], []>} : vector<16x32xf32>, vector<32x64xf32>, vector<16x64xf32> -> vector<16x64xf32>
    %cst_50 = arith.constant 0.000000e+00 : f32
    %183 = vector.broadcast %cst_50 : f32 to vector<16x40xf32>
    %184 = tpu.concatenate %182, %56, %79, %183 in 1 : vector<16x64xf32>, vector<16x16xf32>, vector<16x8xf32>, vector<16x40xf32> -> vector<16x128xf32>
    %c0_51 = arith.constant 0 : index
    %c0_52 = arith.constant 0 : index
    %185 = vector.load %arg3[%c0_51, %c0_52] : memref<16x128xf32, #tpu.memory_space<vmem>>, vector<16x128xf32>
    tpu.vector_store %arg3[%c0_51, %c0_52], %184 {strides = array<i32>} : memref<16x128xf32, #tpu.memory_space<vmem>>, vector<16x128xf32>,
    return
  }
  func.func @transform_0(%arg0: i32) -> (i32, i32) {
    %c0_i32 = arith.constant 0 : i32
    %c0_i32_0 = arith.constant 0 : i32
    %c0_i32_1 = arith.constant 0 : i32
    return %c0_i32, %c0_i32_0 : i32, i32
  }
  func.func @transform_1(%arg0: i32) -> (i32, i32) {
    %c0_i32 = arith.constant 0 : i32
    %c0_i32_0 = arith.constant 0 : i32
    %c0_i32_1 = arith.constant 0 : i32
    return %c0_i32, %c0_i32_0 : i32, i32
  }
  func.func @transform_2(%arg0: i32) -> (i32, i32) {
    %c0_i32 = arith.constant 0 : i32
    %c0_i32_0 = arith.constant 0 : i32
    %c0_i32_1 = arith.constant 0 : i32
    return %c0_i32, %c0_i32_0 : i32, i32
  }
}

</mosaic_0001>

<bundles_post_ra>
// kernel: tpu_custom_call.1
= control target key start
LH: loop header
LB: loop body
LE: loop exit
PB: predicated region body
PF: predicated region fallthrough
CT: control target
= control target key end

     0   :  { %7 = vsyncpa [#allocation3], 0  ;;  %s2770_s0 = inlined_call_operand.hbm [shape: f32[44,64], index: 0, kind: input, shape index: {}]   ;;  %s2771_s1 = inlined_call_operand.hbm [shape: f32[32,264], index: 1, kind: input, shape index: {}]   ;;  %s2772_s2 = inlined_call_operand.hbm [shape: f32[16,128], index: 2, kind: output, shape index: {}]  }
   0x1   :  { %8 = vsyncpa [#allocation6], 0 }
   0x2   :  { %9 = vsyncpa [#allocation4], 0  ;;  %s2404_s9 = smov [#allocation2]   ;;  %s2332_s13 = scalar_lea.hbm %s2770_s0, 768 }
   0x3   :  { %s15_s10 = sshll.u32 %s2404_s9, 4  ;;  %p2333_p0 = scmp.ne.s32.totalorder %s2770_s0, %s2332_s13  ;;  %s16_s10 = int_to_ptr.vmem [resolvable:$true] %s15_s10 }
   0x4   :  { %p2336_p1 = scmp.lt.u32.totalorder %s2332_s13, %s2770_s0 }
   0x6   :  { %p2338_p2 = pnand %p2336_p1, %p2333_p0 }
   0x8   :  { %2341 = shalt.err (!%p2338_p2)
}
   0x9   :  { %s2342_s18 = scalar_lea.vmem %s16_s10, 768  ;;  %p2347_p4 = scmp.lt.s32.totalorder %s16_s10, %s16_s10 }
   0xa   :  { %p2343_p3 = scmp.ne.s32.totalorder %s16_s10, %s2342_s18  ;;  %p2348_p5 = scmp.lt.s32.totalorder %s2342_s18, %s2342_s18 }
   0xc   :  { %p2349_p6 = por %p2348_p5, %p2347_p4 }
   0xe   :  { %p2350_p7 = pnand %p2349_p6, %p2343_p3 }
  0x10   :  { %2353 = shalt.err (!%p2350_p7)
}
  0x11   :  { %s2405_s19 = smov 128   ;;  %s2406_s20 = smov 8  }
  0x12   :  { %21 = dma.hbm_to_vmem [thread:$0]  %s2770_s0, 768, %s16_s10, [#allocation3], %s2405_s19, %s2405_s19, %s2406_s20  }
  0x13   :  { %s2407_s23 = smov [#allocation5]   ;;  %s2354_s27 = scalar_lea.hbm %s2771_s1, 1536 }
  0x14   :  { %s27_s24 = sshll.u32 %s2407_s23, 4  ;;  %p2355_p8 = scmp.ne.s32.totalorder %s2771_s1, %s2354_s27  ;;  %s28_s24 = int_to_ptr.vmem [resolvable:$true] %s27_s24 }
  0x15   :  { %p2358_p9 = scmp.lt.u32.totalorder %s2354_s27, %s2771_s1 }
  0x17   :  { %p2360_p10 = pnand %p2358_p9, %p2355_p8 }
  0x19   :  { %2363 = shalt.err (!%p2360_p10)
}
  0x1a   :  { %s2364_s4 = scalar_lea.vmem %s28_s24, 1536  ;;  %p2369_p12 = scmp.lt.s32.totalorder %s28_s24, %s28_s24 }
  0x1b   :  { %p2365_p11 = scmp.ne.s32.totalorder %s28_s24, %s2364_s4  ;;  %p2370_p13 = scmp.lt.s32.totalorder %s2364_s4, %s2364_s4 }
  0x1d   :  { %p2371_p0 = por %p2370_p13, %p2369_p12 }
  0x1f   :  { %p2372_p1 = pnand %p2371_p0, %p2365_p11 }
  0x21   :  { %2375 = shalt.err (!%p2372_p1)
}
  0x22   :  { %s2408_s0 = smov 384   ;;  %s2409_s5 = smov 24  }
  0x23   :  { %33 = dma.hbm_to_vmem [thread:$0]  %s2771_s1, 1536, %s28_s24, [#allocation6], %s2408_s0, %s2408_s0, %s2409_s5  }
  0x24   :  { %2398 = dma.done.wait [#allocation3], 768  }
  0x25   :  { %2399 = vsyncadd [#allocation3], 4294966528 }
  0x26   :  { %2400 = dma.done.wait [#allocation6], 1536  }
  0x27   :  { %2401 = vsyncadd [#allocation6], 4294965760  ;;  %vm66_vm0 = vcmask 261120   ;;  %v2465_v0 = vld [vmem:[#allocation5 + $0x8] sm:$0xff]  ;;  %v2467_v1 = vld [vmem:[#allocation5 + $0x20] sm:$0xff]  ;;  %s2410_s1 = smov 96   ;;  %v176_v39 = vlaneseq }
  0x28   :  { %v2469_v2 = vld [vmem:[#allocation5 + $0x38] sm:$0xff]  ;;  %v2208_v3 = vpack.i.bf16 %v2467_v1, %v2465_v0  ;;  %v2473_v4 = vld [vmem:[#allocation5 + $0x50] sm:$0xff]  ;;  %vm148_vm1 = vcmask 130048   ;;  %s2411_s8 = smov 112   ;;  %v304_v34 = vld [vmem:[#allocation5] sm:$0xff]  ;;  %s2412_s9 = smov 16  }
  0x29   :  { %v40_v5 = vld [vmem:[#allocation2] sm:$0xff]  ;;  %v2213_v6 = vpack.i.bf16 %v2473_v4, %v2469_v2  ;;  %v41_v15 = vld [vmem:[#allocation2 + $0x8] sm:$0xff]  ;;  %v2507_v44 = vshrl.u32 %v176_v39, 7  ;;  %vm248_vm2 = vcmask 64512   ;;  %s2413_s10 = smov 32   ;;  %s2414_s11 = smov 88  }
  0x2a   :  { %1982 = vmatprep.mubr.msk.f32.mxu0 %vm66_vm0, %v40_v5  ;;  %2209 = vrot.lane.b32.xlu0 %v2208_v3, %s2410_s1  ;;  %v2499_v35 = vld [vmem:[#allocation5 + $0x18] sm:$0xff]  ;;  %vm2594_vm3 = vmpackc.low %vm248_vm2, %vm248_vm2  ;;  %s2415_s12 = smov 80   ;;  %s2416_s13 = smov 120   ;;  %vm1727_vm4 = vcmask 457728   ;;  %vm1692_vm5 = vcmask 195584   ;;  %vm1829_vm6 = vcmask 523264  }
  0x2b   :  { %v2102_v36 = vpack.c.bf16 %v2499_v35, %v304_v34  ;;  %v178_v47 = vsub.s32 0, %v2507_v44  ;;  %v2516_v48 = vld [vmem:[#allocation2 + $0x28] sm:$0xf]  ;;  %v184_v53 = vsub.s32 1, %v2507_v44  ;;  %s2417_s14 = smov 104   ;;  %s2418_s15 = smov 72  }
  0x2c   :  { %s2419_s16 = smov 56   ;;  %s2420_s17 = smov 48   ;;  %vm1832_vm7 = vcmask 654336   ;;  %vm1835_vm8 = vcmask 719872  }
  0x2d   :  { %2103 = vmatprep.subr.bf16.mxu1 %v2102_v36  ;;  %v179_v49 = vrot.slane %v2516_v48, %v178_v47  ;;  %v185_v56 = vrot.slane %v2516_v48, %v184_v53  ;;  %s2421_s18 = smov [#allocation7]  }
  0x2e   :  { %2214 = vrot.lane.b32.xlu0 %v2213_v6, %s2410_s1  ;;  %2105 = vmatpush3.bf16.msra.mxu1 %v2102_v36  ;;  %s1845_s21 = sshll.u32 %s2421_s18, 4  ;;  %s1846_s21 = int_to_ptr.vmem [resolvable:$true] %s1845_s21 }
  0x2f   :  { %s2376_s22 = scalar_lea.vmem %s1846_s21, 256  ;;  %p2381_p3 = scmp.lt.s32.totalorder %s1846_s21, %s1846_s21 }
  0x30   :  { %p2377_p2 = scmp.ne.s32.totalorder %s1846_s21, %s2376_s22  ;;  %p2382_p4 = scmp.lt.s32.totalorder %s2376_s22, %s2376_s22 }
  0x32   :  { %p2383_p5 = por %p2382_p4, %p2381_p3 }
  0x34   :  { %p2384_p6 = pnand %p2383_p5, %p2377_p2 }
  0x9c   :  { %v2210_v7 = vpop.permute.xlu0 %2209 }
  0x9d   :  { %v2212_v8 = vunpack.i.h.bf16 %v2210_v7  ;;  %v2211_v9 = vunpack.i.l.bf16 %v2210_v7 }
  0x9f   :  { %v2094_v10 = vpack.c.bf16 %v2212_v8, %v2211_v9 }
  0xa0   :  { %v2215_v11 = vpop.permute.xlu0 %2214 }
  0xa1   :  { %v2217_v12 = vunpack.i.h.bf16 %v2215_v11  ;;  %v2216_v13 = vunpack.i.l.bf16 %v2215_v11  ;;  %2095 = vmatprep.subr.bf16.mxu0 %v2094_v10 }
  0xa2   :  { %2097 = vmatpush3.bf16.msra.mxu0 %v2094_v10 }
  0xa3   :  { %v2098_v14 = vpack.c.bf16 %v2217_v12, %v2216_v13  ;;  %v2218_v12 = vpack.i.bf16 %v2465_v0, %v304_v34 }
  0xa5   :  { %2099 = vmatprep.subr.bf16.mxu0 %v2098_v14 }
  0xa6   :  { %2101 = vmatpush3.bf16.msra.mxu0 %v2098_v14 }
  0xa9   :  { %1983 = vmatmul.mubr.msk.f32.vlgmr.msra.gmra.mrb[0].mxu0 %vm66_vm0, %v41_v15 }
 0x17c   :  { %v2481_v16 = vpop.f32.mrb[0].mxu0 }
 0x17d   :  { %v2483_v17 = vpop.f32.mrb[1].mxu0  ;;  %v152_v19 = vsel %vm148_vm1, %v2481_v16, 0.0 }
 0x17e   :  { %190 = vrot.lane.b32.xlu1 %v2483_v17, %s2411_s8  ;;  %v149_v18 = vsel %vm148_vm1, %v2483_v17, 0.0 }
 0x17f   :  { %150 = vadd.xlane.f32.xlu0 %v149_v18 }
 0x182   :  { %192 = vrot.lane.b32.xlu1 %v2481_v16, %s2411_s8 }
 0x1a6   :  { %153 = vadd.xlane.f32.xlu1 %v152_v19 }
 0x1f0   :  { %v191_v20 = vpop.permute.xlu1 %190 }
 0x1f1   :  { %v196_v21 = vsel %vm148_vm1, %v191_v20, 0.0 }
 0x1f2   :  { %197 = vadd.xlane.f32.xlu0 %v196_v21 }
 0x1f4   :  { %v193_v22 = vpop.permute.xlu1 %192 }
 0x1f5   :  { %v199_v23 = vsel %vm148_vm1, %v193_v22, 0.0 }
 0x1f6   :  { %200 = vadd.xlane.f32.xlu0 %v199_v23 }
 0x20c   :  { %v151_v24 = vpop.xlane.xlu0 %150 }
 0x20d   :  { %v156_v25 = vmul.f32 0.0625, %v151_v24 }
 0x20f   :  { %v158_v26 = vsub.f32 %v2483_v17, %v156_v25 }
 0x211   :  { %v160_v27 = vmul.f32 %v158_v26, %v158_v26 }
 0x213   :  { %v162_v28 = vsel %vm148_vm1, %v160_v27, 0.0 }
 0x214   :  { %163 = vadd.xlane.f32.xlu1 %v162_v28 }
 0x233   :  { %v154_v29 = vpop.xlane.xlu1 %153 }
 0x234   :  { %v157_v30 = vmul.f32 0.0625, %v154_v29 }
 0x236   :  { %v159_v31 = vsub.f32 %v2481_v16, %v157_v30 }
 0x238   :  { %v161_v32 = vmul.f32 %v159_v31, %v159_v31 }
 0x23a   :  { %v165_v33 = vsel %vm148_vm1, %v161_v32, 0.0 }
 0x23b   :  { %166 = vadd.xlane.f32.xlu0 %v165_v33 }
 0x27f   :  { %v198_v37 = vpop.xlane.xlu0 %197 }
 0x280   :  { %v202_v38 = vmul.f32 0.0625, %v198_v37 }
 0x282   :  { %v2503_v40 = vsub.f32 %v2483_v17, %v202_v38 }
 0x283   :  { %v201_v41 = vpop.xlane.xlu0 %200 }
 0x284   :  { %v203_v42 = vmul.f32 0.0625, %v201_v41  ;;  %v206_v43 = vmul.f32 %v2503_v40, %v2503_v40 }
 0x286   :  { %v2510_v45 = vsub.f32 %v2481_v16, %v203_v42  ;;  %210 = vrot.lane.b32.xlu1 %v206_v43, %s2411_s8 }
 0x288   :  { %v207_v46 = vmul.f32 %v2510_v45, %v2510_v45 }
 0x28a   :  { %242 = vrot.lane.b32.xlu1 %v2483_v17, %s2410_s1  ;;  %212 = vrot.lane.b32.xlu0 %v207_v46, %s2411_s8 }
 0x28e   :  { %231 = vrot.lane.b32.xlu1 %v179_v49, %s2412_s9 }
 0x2a1   :  { %v164_v50 = vpop.xlane.xlu1 %163 }
 0x2a2   :  { %v168_v51 = vmul.f32 0.0625, %v164_v50 }
 0x2a4   :  { %v170_v52 = vadd.f32 1e-05, %v168_v51 }
 0x2a6   :  { %2288 = vrsqrt.f32 %v170_v52 }
 0x2b0   :  { %v2289_v54 = vpop.eup %2288 }
 0x2b1   :  { %v174_v55 = vmul.f32 %v2289_v54, %v158_v26 }
 0x2b3   :  { %v180_v57 = vmul.f32 %v179_v49, %v174_v55 }
 0x2b5   :  { %v186_v58 = vadd.f32 %v185_v56, %v180_v57 }
 0x2b7   :  { %1989 = vmatprep.mubr.msk.f32.mxu1 %vm148_vm1, %v186_v58 }
 0x2c8   :  { %v167_v59 = vpop.xlane.xlu0 %166 }
 0x2c9   :  { %v169_v60 = vmul.f32 0.0625, %v167_v59 }
 0x2cb   :  { %v171_v61 = vadd.f32 1e-05, %v169_v60 }
 0x2cd   :  { %2290 = vrsqrt.f32 %v171_v61 }
 0x2d7   :  { %v2291_v62 = vpop.eup %2290 }
 0x2d8   :  { %v175_v63 = vmul.f32 %v2291_v62, %v159_v31  ;;  %v2223_v31 = vpack.i.bf16 %v2467_v1, %v2499_v35  ;;  %v42_v35 = vld [vmem:[#allocation2 + $0x10] sm:$0xff] }
 0x2da   :  { %v181_v3 = vmul.f32 %v179_v49, %v175_v63 }
 0x2dc   :  { %v187_v5 = vadd.f32 %v185_v56, %v181_v3  ;;  %v286_v3 = vsub.s32 2, %v2507_v44 }
 0x2de   :  { %1990 = vmatmul.mubr.msk.f32.vlgmr.msra.gmra.mrb[0].mxu1 %vm148_vm1, %v187_v5  ;;  %v287_v5 = vrot.slane %v2516_v48, %v286_v3 }
 0x2f8   :  { %v211_v6 = vpop.permute.xlu1 %210 }
 0x2f9   :  { %v216_v7 = vsel %vm148_vm1, %v211_v6, 0.0 }
 0x2fa   :  { %217 = vadd.xlane.f32.xlu1 %v216_v7 }
 0x2fc   :  { %v213_v8 = vpop.permute.xlu0 %212  ;;  %v243_v10 = vpop.permute.xlu1 %242 }
 0x2fd   :  { %v219_v9 = vsel %vm148_vm1, %v213_v8, 0.0  ;;  %v249_v11 = vsel %vm248_vm2, %v243_v10, 0.0 }
 0x2fe   :  { %220 = vadd.xlane.f32.xlu0 %v219_v9 }
 0x300   :  { %v232_v13 = vpop.permute.xlu1 %231 }
 0x30b   :  { %237 = vrot.lane.b32.xlu1 %v185_v56, %s2412_s9 }
 0x314   :  { %244 = vrot.lane.b32.xlu0 %v2481_v16, %s2410_s1 }
 0x333   :  { %250 = vadd.xlane.f32.xlu0 %v249_v11 }
 0x349   :  { %2219 = vrot.lane.b32.xlu0 %v2218_v12, %s2413_s10 }
 0x387   :  { %v218_v14 = vpop.xlane.xlu1 %217 }
 0x388   :  { %v222_v15 = vmul.f32 0.0625, %v218_v14 }
 0x38a   :  { %v224_v18 = vadd.f32 1e-05, %v222_v15 }
 0x38b   :  { %v221_v19 = vpop.xlane.xlu0 %220  ;;  %v238_v26 = vpop.permute.xlu1 %237 }
 0x38c   :  { %2292 = vrsqrt.f32 %v224_v18  ;;  %v223_v20 = vmul.f32 0.0625, %v221_v19 }
 0x38e   :  { %v225_v21 = vadd.f32 1e-05, %v223_v20 }
 0x38f   :  { %v245_v22 = vpop.permute.xlu0 %244 }
 0x390   :  { %2294 = vrsqrt.f32 %v225_v21  ;;  %v252_v23 = vsel %vm248_vm2, %v245_v22, 0.0 }
 0x391   :  { %253 = vadd.xlane.f32.xlu1 %v252_v23 }
 0x396   :  { %v2293_v24 = vpop.eup %2292 }
 0x397   :  { %v228_v25 = vmul.f32 %v2293_v24, %v2503_v40 }
 0x399   :  { %v234_v27 = vmul.f32 %v232_v13, %v228_v25 }
 0x39a   :  { %v2295_v28 = vpop.eup %2294 }
 0x39b   :  { %v2537_v29 = vadd.f32 %v238_v26, %v234_v27  ;;  %v229_v30 = vmul.f32 %v2295_v28, %v2510_v45 }
 0x39d   :  { %393 = vrot.lane.b32.xlu0 %v2537_v29, %s2411_s8  ;;  %v235_v32 = vmul.f32 %v232_v13, %v229_v30 }
 0x39f   :  { %v2545_v33 = vadd.f32 %v238_v26, %v235_v32 }
 0x3a2   :  { %2224 = vrot.lane.b32.xlu1 %v2223_v31, %s2413_s10 }
 0x3a6   :  { %395 = vrot.lane.b32.xlu1 %v2545_v33, %s2411_s8 }
 0x3b1   :  { %v2549_v34 = vpop.f32.mrb[0].mxu1 }
 0x3b2   :  { %v2551_v36 = vpop.f32.mrb[1].mxu1 }
 0x3c0   :  { %v251_v37 = vpop.xlane.xlu0 %250 }
 0x3c1   :  { %v256_v38 = vmul.f32 0.125, %v251_v37 }
 0x3c3   :  { %v258_v39 = vsub.f32 %v2483_v17, %v256_v38 }
 0x3c4   :  { %v2220_v41 = vpop.permute.xlu0 %2219 }
 0x3c5   :  { %v260_v40 = vmul.f32 %v258_v39, %v258_v39  ;;  %v2222_v45 = vunpack.i.h.bf16 %v2220_v41  ;;  %v2221_v46 = vunpack.i.l.bf16 %v2220_v41 }
 0x3c7   :  { %264 = vrot.lane.b32.xlu0 %v260_v40, %s2410_s1  ;;  %v409_v53 = vsel %vm66_vm0, %v2221_v46, %v2222_v45  ;;  %v2621_v45 = vld [vmem:[#allocation2 + $0x20] sm:$0xff] }
 0x3cb   :  { %493 = vrot.lane.b32.xlu0 %v42_v35, %s2413_s10 }
 0x40f   :  { %v394_v42 = vpop.permute.xlu0 %393 }
 0x410   :  { %1996 = vmatprep.mubr.msk.f32.mxu1 %vm148_vm1, %v394_v42 }
 0x41e   :  { %v254_v43 = vpop.xlane.xlu1 %253 }
 0x41f   :  { %v257_v47 = vmul.f32 0.125, %v254_v43 }
 0x421   :  { %v259_v49 = vsub.f32 %v2481_v16, %v257_v47  ;;  %v296_v16 = vsub.s32 3, %v2507_v44 }
 0x422   :  { %v2225_v50 = vpop.permute.xlu1 %2224 }
 0x423   :  { %v2227_v51 = vunpack.i.h.bf16 %v2225_v50  ;;  %v2226_v52 = vunpack.i.l.bf16 %v2225_v50  ;;  %v261_v17 = vmul.f32 %v259_v49, %v259_v49  ;;  %v297_v59 = vrot.slane %v2516_v48, %v296_v16 }
 0x425   :  { %266 = vrot.lane.b32.xlu1 %v261_v17, %s2410_s1  ;;  %v410_v54 = vsel %vm66_vm0, %v2226_v52, %v2227_v51 }
 0x426   :  { %v2106_v55 = vpack.c.bf16 %v410_v54, %v409_v53  ;;  %v396_v56 = vpop.permute.xlu1 %395 }
 0x428   :  { %2107 = vmatprep.subr.bf16.mxu1 %v2106_v55 }
 0x429   :  { %2109 = vmatpush3.bf16.msra.mxu1 %v2106_v55 }
 0x42c   :  { %1997 = vmatmul.mubr.msk.f32.vlgmr.msra.gmra.mrb[2].mxu1 %vm148_vm1, %v396_v56 }
 0x439   :  { %v265_v57 = vpop.permute.xlu0 %264 }
 0x43a   :  { %v270_v58 = vsel %vm248_vm2, %v265_v57, 0.0 }
 0x43d   :  { %v494_v60 = vpop.permute.xlu0 %493 }
 0x43e   :  { %v496_v61 = vmul.f32 %v494_v60, %v2551_v36  ;;  %v497_v6 = vmul.f32 %v2549_v34, %v494_v60 }
 0x449   :  { %271 = vadd.xlane.f32.xlu1 %v270_v58 }
 0x45a   :  { %299 = vrot.lane.b32.xlu1 %v297_v59, %s2413_s10 }
 0x45e   :  { %500 = vrot.lane.b32.xlu1 %v496_v61, %s2410_s1 }
 0x497   :  { %v267_v62 = vpop.permute.xlu1 %266 }
 0x498   :  { %v273_v63 = vsel %vm248_vm2, %v267_v62, 0.0 }
 0x499   :  { %274 = vadd.xlane.f32.xlu0 %v273_v63 }
 0x4af   :  { %289 = vrot.lane.b32.xlu0 %v287_v5, %s2413_s10 }
 0x4b3   :  { %502 = vrot.lane.b32.xlu0 %v497_v6, %s2410_s1 }
 0x4d6   :  { %v272_v7 = vpop.xlane.xlu1 %271 }
 0x4d7   :  { %v276_v48 = vmul.f32 0.125, %v272_v7 }
 0x4d9   :  { %v278_v14 = vadd.f32 1e-05, %v276_v48 }
 0x4da   :  { %v300_v8 = vpop.permute.xlu1 %299 }
 0x4db   :  { %2296 = vrsqrt.f32 %v278_v14 }
 0x4de   :  { %v501_v9 = vpop.permute.xlu1 %500 }
 0x4df   :  { %v2574_v10 = vadd.f32 %v501_v9, %v496_v61 }
 0x4e1   :  { %510 = vrot.lane.b32.xlu0 %v2574_v10, %s2410_s1 }
 0x4e5   :  { %v2297_v20 = vpop.eup %2296 }
 0x4e6   :  { %v282_v22 = vmul.f32 %v2297_v20, %v258_v39 }
 0x4ff   :  { %v1998_v11 = vpop.f32.mrb[2].mxu1 }
 0x500   :  { %v483_v12 = vpop.f32.mrb[3].mxu1 }
 0x501   :  { %v2116_v13 = vpack.c.bf16 %v1998_v11, %v483_v12  ;;  %v2578_v44 = vpack.i.bf16 %v1998_v11, %v483_v12 }
 0x526   :  { %v275_v15 = vpop.xlane.xlu0 %274 }
 0x527   :  { %v277_v18 = vmul.f32 0.125, %v275_v15 }
 0x529   :  { %v279_v19 = vadd.f32 1e-05, %v277_v18 }
 0x52a   :  { %v290_v21 = vpop.permute.xlu0 %289 }
 0x52b   :  { %2298 = vrsqrt.f32 %v279_v19  ;;  %v292_v25 = vmul.f32 %v290_v21, %v282_v22 }
 0x52d   :  { %v2580_v27 = vadd.f32 %v300_v8, %v292_v25 }
 0x52e   :  { %v503_v31 = vpop.permute.xlu0 %502 }
 0x52f   :  { %v2587_v32 = vadd.f32 %v503_v31, %v497_v6 }
 0x535   :  { %v2299_v23 = vpop.eup %2298 }
 0x536   :  { %v283_v24 = vmul.f32 %v2299_v23, %v259_v49  ;;  %v2623_v49 = vld [vmem:[#allocation2 + $0x18] sm:$0xff] }
 0x538   :  { %v293_v26 = vmul.f32 %v290_v21, %v283_v24 }
 0x53a   :  { %v2582_v28 = vadd.f32 %v300_v8, %v293_v26 }
 0x53c   :  { %v2228_v30 = vpack.i.bf16 %v2582_v28, %v2580_v27 }
 0x53e   :  { %2229 = vrot.lane.b32.xlu1 %v2228_v30, %s2410_s1 }
 0x542   :  { %512 = vrot.lane.b32.xlu1 %v2587_v32, %s2410_s1 }
 0x553   :  { %v511_v37 = vpop.permute.xlu0 %510 }
 0x554   :  { %2003 = vmatprep.mubr.msk.f32.mxu0 %vm248_vm2, %v511_v37 }
 0x5b0   :  { %v2230_v38 = vpop.permute.xlu1 %2229 }
 0x5b1   :  { %v2232_v39 = vunpack.i.h.bf16 %v2230_v38  ;;  %v2231_v40 = vunpack.i.l.bf16 %v2230_v38 }
 0x5b3   :  { %v2598_v41 = vpack.c.bf16 %v2232_v39, %v2231_v40 }
 0x5b4   :  { %v513_v42 = vpop.permute.xlu1 %512 }
 0x5b5   :  { %2112 = vmatprep.subr.msk.bf16.mxu0 %vm2594_vm3, %v2598_v41 }
 0x5b6   :  { %2115 = vmatpush3.bf16.xpose.msk.msra.mxu0 %vm2594_vm3, %v2598_v41 }
 0x5b7   :  { %2118 = vmatprep.subr.msk.bf16.mxu0 %vm2594_vm3, %v2116_v13 }
 0x5bd   :  { %2004 = vmatmul.mubr.msk.f32.vlgmr.msra.gmra.mrb[2].mxu0 %vm248_vm2, %v513_v42 }
 0x5be   :  { %2121 = vmatpush3.bf16.xpose.msk.msra.mxu0 %vm2594_vm3, %v2116_v13  ;;  %2010 = vmatprep.mubr.msk.f32.mxu0 %vm248_vm2, %v2551_v36 }
 0x5bf   :  { %2144 = vmatprep.subr.msk.bf16.mxu0 %vm2594_vm3, %v2598_v41 }
 0x5c5   :  { %2011 = vmatmul.mubr.msk.f32.vlgmr.msra.gmra.mrb[2].mxu0 %vm248_vm2, %v2549_v34 }
 0x5c6   :  { %2147 = vmatpush3.bf16.xpose.msk.msra.mxu0 %vm2594_vm3, %v2598_v41 }
 0x698   :  { %v2012_v43 = vpop.f32.mrb[2].mxu0 }
 0x699   :  { %v691_v46 = vmul.f32 0.25, %v2012_v43  ;;  %v681_v47 = vpop.f32.mrb[3].mxu0 }
 0x69a   :  { %v690_v50 = vmul.f32 0.25, %v681_v47 }
 0x69b   :  { %v693_v51 = vadd.f32 %v691_v46, %v2621_v45 }
 0x69c   :  { %v692_v52 = vadd.f32 %v690_v50, %v2623_v49 }
 0x69d   :  { %v697_v17 = vsel %vm148_vm1, %v693_v51, -inf }
 0x69e   :  { %698 = vmax.xlane.f32.xlu1 %v697_v17  ;;  %v694_v53 = vsel %vm148_vm1, %v692_v52, -inf }
 0x69f   :  { %695 = vmax.xlane.f32.xlu0 %v694_v53 }
 0x6af   :  { %2234 = vrot.lane.b32.xlu1 %v2578_v44, %s2410_s1 }
 0x6b3   :  { %803 = vrot.lane.b32.xlu1 %v2574_v10, %s2414_s11 }
 0x6b7   :  { %805 = vrot.lane.b32.xlu1 %v2587_v32, %s2414_s11 }
 0x6bb   :  { %2244 = vrot.lane.b32.xlu1 %v2578_v44, %s2411_s8 }
 0x6bf   :  { %1090 = vrot.lane.b32.xlu1 %v2574_v10, %s2415_s12 }
 0x6c3   :  { %1173 = vrot.lane.b32.xlu1 %v2551_v36, %s2411_s8 }
 0x72b   :  { %v699_v54 = vpop.xlane.xlu1 %698 }
 0x72c   :  { %v701_v55 = vsub.f32 %v693_v51, %v699_v54  ;;  %v696_v56 = vpop.xlane.xlu0 %695 }
 0x72d   :  { %v700_v57 = vsub.f32 %v692_v52, %v696_v56 }
 0x72e   :  { %v704_v58 = vmul.f32 1.442695, %v701_v55 }
 0x72f   :  { %v702_v16 = vmul.f32 1.442695, %v700_v57  ;;  %v2235_v59 = vpop.permute.xlu1 %2234 }
 0x730   :  { %v2237_v60 = vunpack.i.h.bf16 %v2235_v59  ;;  %v2236_v61 = vunpack.i.l.bf16 %v2235_v59 }
 0x731   :  { %2300 = vpow2.f32 %v702_v16 }
 0x732   :  { %v2122_v62 = vpack.c.bf16 %v2237_v60, %v2236_v61  ;;  %2302 = vpow2.f32 %v704_v58 }
 0x733   :  { %v804_v63 = vpop.permute.xlu1 %803 }
 0x734   :  { %2123 = vmatprep.subr.bf16.mxu1 %v2122_v62 }
 0x735   :  { %2125 = vmatpush3.bf16.msra.mxu1 %v2122_v62 }
 0x736   :  { %2128 = vmatprep.subr.msk.bf16.mxu1 %vm2594_vm3, %v2598_v41 }
 0x737   :  { %v806_v3 = vpop.permute.xlu1 %805 }
 0x73b   :  { %v2301_v5 = vpop.eup %2300  ;;  %v2245_v6 = vpop.permute.xlu1 %2244 }
 0x73c   :  { %v2247_v7 = vunpack.i.h.bf16 %v2245_v6  ;;  %v2246_v8 = vunpack.i.l.bf16 %v2245_v6  ;;  %v706_v9 = vsel %vm148_vm1, %v2301_v5, 0.0  ;;  %v2303_v11 = vpop.eup %2302 }
 0x73d   :  { %707 = vadd.xlane.f32.xlu0 %v706_v9  ;;  %v709_v48 = vsel %vm148_vm1, %v2303_v11, 0.0 }
 0x73e   :  { %v2148_v12 = vpack.c.bf16 %v2247_v7, %v2246_v8 }
 0x73f   :  { %v1091_v13 = vpop.permute.xlu1 %1090 }
 0x740   :  { %2045 = vmatprep.mubr.msk.f32.mxu0 %vm248_vm2, %v1091_v13  ;;  %2150 = vmatprep.subr.msk.bf16.mxu0 %vm2594_vm3, %v2148_v12 }
 0x741   :  { %710 = vadd.xlane.f32.xlu0 %v709_v48 }
 0x743   :  { %v1174_v37 = vpop.permute.xlu1 %1173 }
 0x757   :  { %2239 = vrot.lane.b32.xlu0 %v2578_v44, %s2416_s13 }
 0x75b   :  { %886 = vrot.lane.b32.xlu0 %v2551_v36, %s2416_s13 }
 0x75f   :  { %888 = vrot.lane.b32.xlu0 %v2549_v34, %s2416_s13 }
 0x763   :  { %1092 = vrot.lane.b32.xlu0 %v2587_v32, %s2415_s12 }
 0x767   :  { %1175 = vrot.lane.b32.xlu0 %v2549_v34, %s2411_s8 }
 0x7ca   :  { %v708_v14 = vpop.xlane.xlu0 %707 }
 0x7cb   :  { %2304 = vrcp.f32 %v708_v14 }
 0x7ce   :  { %v711_v15 = vpop.xlane.xlu0 %710 }
 0x7cf   :  { %2306 = vrcp.f32 %v711_v15 }
 0x7d2   :  { %v2240_v18 = vpop.permute.xlu0 %2239 }
 0x7d3   :  { %v2242_v22 = vunpack.i.h.bf16 %v2240_v18  ;;  %v2241_v23 = vunpack.i.l.bf16 %v2240_v18 }
 0x7d5   :  { %v2305_v19 = vpop.eup %2304  ;;  %v2132_v30 = vpack.c.bf16 %v2242_v22, %v2241_v23 }
 0x7d6   :  { %v887_v20 = vpop.permute.xlu0 %886  ;;  %v714_v21 = vmul.f32 %v2305_v19, %v2301_v5 }
 0x7d8   :  { %2017 = vmatprep.mubr.msk.f32.mxu1 %vm148_vm1, %v714_v21 }
 0x7d9   :  { %v2307_v24 = vpop.eup %2306 }
 0x7da   :  { %v715_v25 = vmul.f32 %v2307_v24, %v2303_v11  ;;  %v889_v26 = vpop.permute.xlu0 %888 }
 0x7dc   :  { %2018 = vmatmul.mubr.msk.f32.vlgmr.msra.gmra.mrb[4].mxu1 %vm148_vm1, %v715_v25 }
 0x7dd   :  { %2131 = vmatpush3.bf16.xpose.msk.msra.mxu1 %vm2594_vm3, %v2598_v41  ;;  %2024 = vmatprep.mubr.msk.f32.mxu1 %vm248_vm2, %v804_v63 }
 0x7de   :  { %2134 = vmatprep.subr.msk.bf16.mxu1 %vm2594_vm3, %v2132_v30  ;;  %v1093_v31 = vpop.permute.xlu0 %1092 }
 0x7df   :  { %2046 = vmatmul.mubr.msk.f32.vlgmr.msra.gmra.mrb[4].mxu0 %vm248_vm2, %v1093_v31 }
 0x7e0   :  { %2153 = vmatpush3.bf16.xpose.msk.msra.mxu0 %vm2594_vm3, %v2148_v12  ;;  %2052 = vmatprep.mubr.msk.f32.mxu0 %vm248_vm2, %v1174_v37 }
 0x7e2   :  { %v1176_v38 = vpop.permute.xlu0 %1175 }
 0x7e4   :  { %2025 = vmatmul.mubr.msk.f32.vlgmr.msra.gmra.mrb[6].mxu1 %vm248_vm2, %v806_v3 }
 0x7e5   :  { %2137 = vmatpush3.bf16.xpose.msk.msra.mxu1 %vm2594_vm3, %v2132_v30  ;;  %2031 = vmatprep.mubr.msk.f32.mxu1 %vm248_vm2, %v887_v20 }
 0x7e7   :  { %2053 = vmatmul.mubr.msk.f32.vlgmr.msra.gmra.mrb[4].mxu0 %vm248_vm2, %v1176_v38 }
 0x7ec   :  { %2032 = vmatmul.mubr.msk.f32.vlgmr.msra.gmra.mrb[6].mxu1 %vm248_vm2, %v889_v26 }
 0x8af   :  { %v2674_v39 = vpop.f32.mrb[4].mxu1 }
 0x8b0   :  { %v2676_v40 = vpop.f32.mrb[5].mxu1 }
 0x8ba   :  { %v2054_v42 = vpop.f32.mrb[4].mxu0 }
 0x8bb   :  { %v1255_v43 = vpop.f32.mrb[5].mxu0  ;;  %v1265_v52 = vmul.f32 0.25, %v2054_v42 }
 0x8bc   :  { %v1264_v47 = vmul.f32 0.25, %v1255_v43 }
 0x8bd   :  { %v1267_v58 = vadd.f32 %v1265_v52, %v2621_v45 }
 0x8be   :  { %v1266_v56 = vadd.f32 %v1264_v47, %v2623_v49 }
 0x8bf   :  { %v2033_v46 = vpop.f32.mrb[6].mxu1  ;;  %v1271_v59 = vsel %vm148_vm1, %v1267_v58, -inf }
 0x8c0   :  { %v978_v50 = vmul.f32 0.25, %v2033_v46  ;;  %v968_v51 = vpop.f32.mrb[7].mxu1  ;;  %v1268_v16 = vsel %vm148_vm1, %v1266_v56, -inf }
 0x8c1   :  { %v977_v17 = vmul.f32 0.25, %v968_v51 }
 0x8c2   :  { %v980_v53 = vadd.f32 %v978_v50, %v2621_v45 }
 0x8c3   :  { %v979_v54 = vadd.f32 %v977_v17, %v2623_v49 }
 0x8c4   :  { %v984_v55 = vsel %vm148_vm1, %v980_v53, -inf }
 0x8c5   :  { %985 = vmax.xlane.f32.xlu0 %v984_v55  ;;  %v981_v57 = vsel %vm148_vm1, %v979_v54, -inf }
 0x8c6   :  { %982 = vmax.xlane.f32.xlu1 %v981_v57 }
 0x8c9   :  { %1269 = vmax.xlane.f32.xlu0 %v1268_v16 }
 0x8ca   :  { %1272 = vmax.xlane.f32.xlu1 %v1271_v59 }
 0x952   :  { %v986_v60 = vpop.xlane.xlu0 %985 }
 0x953   :  { %v983_v61 = vpop.xlane.xlu1 %982  ;;  %v988_v63 = vsub.f32 %v980_v53, %v986_v60 }
 0x954   :  { %v987_v62 = vsub.f32 %v979_v54, %v983_v61 }
 0x955   :  { %v991_v11 = vmul.f32 1.442695, %v988_v63 }
 0x956   :  { %v1270_v3 = vpop.xlane.xlu0 %1269  ;;  %v989_v8 = vmul.f32 1.442695, %v987_v62 }
 0x957   :  { %v1274_v5 = vsub.f32 %v1266_v56, %v1270_v3  ;;  %v1273_v6 = vpop.xlane.xlu1 %1272 }
 0x958   :  { %v1275_v7 = vsub.f32 %v1267_v58, %v1273_v6 }
 0x959   :  { %v1276_v9 = vmul.f32 1.442695, %v1274_v5 }
 0x95a   :  { %v1278_v12 = vmul.f32 1.442695, %v1275_v7 }
 0x95b   :  { %2308 = vpow2.f32 %v1276_v9  ;;  %v1698_v9 = vld [vmem:[#allocation5 + $0x28] sm:$0xff] }
 0x95c   :  { %2310 = vpow2.f32 %v1278_v12  ;;  %v1700_v12 = vld [vmem:[#allocation5 + $0x40] sm:$0xff] }
 0x95d   :  { %2312 = vpow2.f32 %v989_v8 }
 0x95e   :  { %2314 = vpow2.f32 %v991_v11  ;;  %v2273_v11 = vpack.i.bf16 %v1698_v9, %v2467_v1 }
 0x965   :  { %v2309_v13 = vpop.eup %2308 }
 0x966   :  { %v2311_v48 = vpop.eup %2310  ;;  %v1280_v14 = vsel %vm148_vm1, %v2309_v13, 0.0 }
 0x967   :  { %v2313_v15 = vpop.eup %2312  ;;  %1281 = vadd.xlane.f32.xlu0 %v1280_v14  ;;  %v1283_v18 = vsel %vm148_vm1, %v2311_v48, 0.0 }
 0x968   :  { %v2315_v19 = vpop.eup %2314  ;;  %1284 = vadd.xlane.f32.xlu1 %v1283_v18  ;;  %v993_v20 = vsel %vm148_vm1, %v2313_v15, 0.0 }
 0x969   :  { %v996_v21 = vsel %vm148_vm1, %v2315_v19, 0.0 }
 0x96b   :  { %994 = vadd.xlane.f32.xlu0 %v993_v20 }
 0x96c   :  { %997 = vadd.xlane.f32.xlu1 %v996_v21 }
 0x97d   :  { %2254 = vrot.lane.b32.xlu1 %v2578_v44, %s2415_s12 }
 0x981   :  { %2249 = vrot.lane.b32.xlu0 %v2578_v44, %s2414_s11  ;;  %2259 = vrot.lane.b32.xlu1 %v2578_v44, %s2417_s14 }
 0x985   :  { %1377 = vrot.lane.b32.xlu0 %v2574_v10, %s2418_s15  ;;  %1379 = vrot.lane.b32.xlu1 %v2587_v32, %s2418_s15 }
 0x989   :  { %1460 = vrot.lane.b32.xlu0 %v2551_v36, %s2417_s14  ;;  %1462 = vrot.lane.b32.xlu1 %v2549_v34, %s2417_s14 }
 0x9f4   :  { %v1282_v22 = vpop.xlane.xlu0 %1281 }
 0x9f5   :  { %v1285_v23 = vpop.xlane.xlu1 %1284  ;;  %2316 = vrcp.f32 %v1282_v22 }
 0x9f8   :  { %v995_v24 = vpop.xlane.xlu0 %994 }
 0x9f9   :  { %2318 = vrcp.f32 %v995_v24  ;;  %v998_v25 = vpop.xlane.xlu1 %997  ;;  %v1696_v24 = vld [vmem:[#allocation5 + $0x10] sm:$0xff] }
 0x9fa   :  { %2320 = vrcp.f32 %v998_v25  ;;  %v2268_v25 = vpack.i.bf16 %v1696_v24, %v2465_v0 }
 0x9fb   :  { %2322 = vrcp.f32 %v1285_v23 }
 0x9fc   :  { %v2250_v26 = vpop.permute.xlu0 %2249 }
 0x9fd   :  { %v2252_v30 = vunpack.i.h.bf16 %v2250_v26  ;;  %v2251_v31 = vunpack.i.l.bf16 %v2250_v26  ;;  %v2255_v37 = vpop.permute.xlu1 %2254  ;;  %v1702_v26 = vld [vmem:[#allocation5 + $0x58] sm:$0xff] }
 0x9fe   :  { %v2257_v10 = vunpack.i.h.bf16 %v2255_v37  ;;  %v2256_v38 = vunpack.i.l.bf16 %v2255_v37 }
 0x9ff   :  { %v2138_v42 = vpack.c.bf16 %v2252_v30, %v2251_v31  ;;  %v2317_v36 = vpop.eup %2316  ;;  %v2283_v30 = vpack.i.bf16 %v1702_v26, %v2473_v4 }
 0xa00   :  { %v2154_v32 = vpack.c.bf16 %v2257_v10, %v2256_v38  ;;  %v1288_v51 = vmul.f32 %v2317_v36, %v2309_v13  ;;  %v1378_v53 = vpop.permute.xlu0 %1377 }
 0xa01   :  { %2139 = vmatprep.subr.bf16.mxu1 %v2138_v42  ;;  %v2260_v17 = vpop.permute.xlu1 %2259 }
 0xa02   :  { %2141 = vmatpush3.bf16.msra.mxu1 %v2138_v42  ;;  %v2262_v54 = vunpack.i.h.bf16 %v2260_v17  ;;  %v2261_v55 = vunpack.i.l.bf16 %v2260_v17 }
 0xa03   :  { %v2319_v34 = vpop.eup %2318  ;;  %2155 = vmatprep.subr.bf16.mxu1 %v2154_v32 }
 0xa04   :  { %v2321_v43 = vpop.eup %2320  ;;  %v1001_v46 = vmul.f32 %v2319_v34, %v2313_v15  ;;  %v2164_v56 = vpack.c.bf16 %v2262_v54, %v2261_v55  ;;  %v1461_v58 = vpop.permute.xlu0 %1460 }
 0xa05   :  { %v1002_v47 = vmul.f32 %v2321_v43, %v2315_v19  ;;  %v2323_v50 = vpop.eup %2322  ;;  %v1380_v57 = vpop.permute.xlu1 %1379 }
 0xa06   :  { %2038 = vmatprep.mubr.msk.f32.mxu1 %vm148_vm1, %v1001_v46  ;;  %v1289_v52 = vmul.f32 %v2323_v50, %v2311_v48 }
 0xa07   :  { %2039 = vmatmul.mubr.msk.f32.vlgmr.msra.gmra.mrb[8].mxu1 %vm148_vm1, %v1002_v47 }
 0xa08   :  { %2157 = vmatpush3.bf16.msra.mxu1 %v2154_v32  ;;  %2059 = vmatprep.mubr.msk.f32.mxu1 %vm148_vm1, %v1288_v51 }
 0xa09   :  { %2160 = vmatprep.subr.msk.bf16.mxu1 %vm2594_vm3, %v2598_v41  ;;  %v1463_v16 = vpop.permute.xlu1 %1462 }
 0xa0b   :  { %2060 = vmatmul.mubr.msk.f32.vlgmr.msra.gmra.mrb[10].mxu1 %vm148_vm1, %v1289_v52 }
 0xa0c   :  { %2066 = vmatprep.mubr.msk.f32.mxu1 %vm248_vm2, %v1378_v53 }
 0xa11   :  { %2163 = vmatpush3.bf16.xpose.msk.msra.mxu1 %vm2594_vm3, %v2598_v41 }
 0xa12   :  { %2166 = vmatprep.subr.msk.bf16.mxu1 %vm2594_vm3, %v2164_v56 }
 0xa18   :  { %2067 = vmatmul.mubr.msk.f32.vlgmr.msra.gmra.mrb[12].mxu1 %vm248_vm2, %v1380_v57 }
 0xa19   :  { %2169 = vmatpush3.bf16.xpose.msk.msra.mxu1 %vm2594_vm3, %v2164_v56  ;;  %2073 = vmatprep.mubr.msk.f32.mxu1 %vm248_vm2, %v1461_v58 }
 0xa20   :  { %2074 = vmatmul.mubr.msk.f32.vlgmr.msra.gmra.mrb[12].mxu1 %vm248_vm2, %v1463_v16 }
 0xada   :  { %v2040_v59 = vpop.f32.mrb[8].mxu1 }
 0xadb   :  { %v1081_v60 = vpop.f32.mrb[9].mxu1 }
 0xade   :  { %v2061_v61 = vpop.f32.mrb[10].mxu1 }
 0xadf   :  { %v1368_v62 = vpop.f32.mrb[11].mxu1 }
 0xaf3   :  { %v2075_v41 = vpop.f32.mrb[12].mxu1 }
 0xaf4   :  { %v1552_v63 = vmul.f32 0.25, %v2075_v41  ;;  %v1542_v3 = vpop.f32.mrb[13].mxu1 }
 0xaf5   :  { %v1551_v5 = vmul.f32 0.25, %v1542_v3 }
 0xaf6   :  { %v1554_v6 = vadd.f32 %v1552_v63, %v2621_v45  ;;  %v2278_v45 = vpack.i.bf16 %v1700_v12, %v2469_v2 }
 0xaf7   :  { %v1553_v7 = vadd.f32 %v1551_v5, %v2623_v49 }
 0xaf8   :  { %v1558_v35 = vsel %vm148_vm1, %v1554_v6, -inf }
 0xaf9   :  { %1559 = vmax.xlane.f32.xlu1 %v1558_v35  ;;  %v1555_v8 = vsel %vm148_vm1, %v1553_v7, -inf }
 0xafa   :  { %1556 = vmax.xlane.f32.xlu0 %v1555_v8 }
 0xb0a   :  { %2264 = vrot.lane.b32.xlu1 %v2578_v44, %s2418_s15 }
 0xb0e   :  { %2274 = vrot.lane.b32.xlu1 %v2273_v11, %s2419_s16 }
 0xb12   :  { %2279 = vrot.lane.b32.xlu1 %v2278_v45, %s2419_s16 }
 0xb16   :  { %1666 = vrot.lane.b32.xlu1 %v1081_v60, %s2406_s20 }
 0xb1a   :  { %1674 = vrot.lane.b32.xlu1 %v1368_v62, %s2412_s9 }
 0xb86   :  { %v1560_v49 = vpop.xlane.xlu1 %1559 }
 0xb87   :  { %v1562_v13 = vsub.f32 %v1554_v6, %v1560_v49  ;;  %v1557_v48 = vpop.xlane.xlu0 %1556 }
 0xb88   :  { %v1561_v14 = vsub.f32 %v1553_v7, %v1557_v48 }
 0xb89   :  { %v1565_v15 = vmul.f32 1.442695, %v1562_v13 }
 0xb8a   :  { %v1563_v44 = vmul.f32 1.442695, %v1561_v14  ;;  %v2265_v18 = vpop.permute.xlu1 %2264 }
 0xb8b   :  { %v2267_v1 = vunpack.i.h.bf16 %v2265_v18  ;;  %v2266_v19 = vunpack.i.l.bf16 %v2265_v18 }
 0xb8c   :  { %2324 = vpow2.f32 %v1563_v44 }
 0xb8d   :  { %v2170_v20 = vpack.c.bf16 %v2267_v1, %v2266_v19  ;;  %2326 = vpow2.f32 %v1565_v15 }
 0xb8e   :  { %v2275_v32 = vpop.permute.xlu1 %2274 }
 0xb8f   :  { %2171 = vmatprep.subr.bf16.mxu0 %v2170_v20  ;;  %v2277_v34 = vunpack.i.h.bf16 %v2275_v32  ;;  %v2276_v43 = vunpack.i.l.bf16 %v2275_v32 }
 0xb90   :  { %2173 = vmatpush3.bf16.msra.mxu0 %v2170_v20 }
 0xb91   :  { %v1729_v55 = vsel %vm1727_vm4, %v2276_v43, %v2277_v34 }
 0xb92   :  { %v2280_v36 = vpop.permute.xlu1 %2279 }
 0xb93   :  { %v2282_v46 = vunpack.i.h.bf16 %v2280_v36  ;;  %v2281_v47 = vunpack.i.l.bf16 %v2280_v36 }
 0xb95   :  { %v1730_v56 = vsel %vm1727_vm4, %v2281_v47, %v2282_v46 }
 0xb96   :  { %v2325_v2 = vpop.eup %2324  ;;  %v1667_v62 = vpop.permute.xlu1 %1666 }
 0xb97   :  { %v1567_v21 = vsel %vm148_vm1, %v2325_v2, 0.0  ;;  %v2327_v22 = vpop.eup %2326  ;;  %v1688_v3 = vsel %vm248_vm2, %v2676_v40, %v1667_v62 }
 0xb98   :  { %1568 = vadd.xlane.f32.xlu0 %v1567_v21  ;;  %v1570_v23 = vsel %vm148_vm1, %v2327_v22, 0.0 }
 0xb9a   :  { %v1675_v63 = vpop.permute.xlu1 %1674 }
 0xb9b   :  { %v1690_v6 = vsel %vm148_vm1, %v1688_v3, %v1675_v63 }
 0xb9c   :  { %1571 = vadd.xlane.f32.xlu0 %v1570_v23 }
 0xbb2   :  { %2269 = vrot.lane.b32.xlu0 %v2268_v25, %s2419_s16 }
 0xbb6   :  { %2284 = vrot.lane.b32.xlu0 %v2283_v30, %s2419_s16 }
 0xbba   :  { %1668 = vrot.lane.b32.xlu0 %v2040_v59, %s2406_s20 }
 0xbbe   :  { %1676 = vrot.lane.b32.xlu0 %v2061_v61, %s2412_s9 }
 0xc25   :  { %v1569_v31 = vpop.xlane.xlu0 %1568 }
 0xc26   :  { %2328 = vrcp.f32 %v1569_v31 }
 0xc29   :  { %v1572_v37 = vpop.xlane.xlu0 %1571 }
 0xc2a   :  { %2330 = vrcp.f32 %v1572_v37 }
 0xc2d   :  { %v2270_v4 = vpop.permute.xlu0 %2269 }
 0xc2e   :  { %v2272_v51 = vunpack.i.h.bf16 %v2270_v4  ;;  %v2271_v52 = vunpack.i.l.bf16 %v2270_v4 }
 0xc30   :  { %v2329_v10 = vpop.eup %2328  ;;  %v1728_v54 = vsel %vm1727_vm4, %v2271_v52, %v2272_v51 }
 0xc31   :  { %v1575_v38 = vmul.f32 %v2329_v10, %v2325_v2  ;;  %v2285_v50 = vpop.permute.xlu0 %2284  ;;  %v2174_v58 = vpack.c.bf16 %v1729_v55, %v1728_v54 }
 0xc32   :  { %v2287_v17 = vunpack.i.h.bf16 %v2285_v50  ;;  %v2286_v53 = vunpack.i.l.bf16 %v2285_v50 }
 0xc33   :  { %2080 = vmatprep.mubr.msk.f32.mxu0 %vm148_vm1, %v1575_v38  ;;  %2175 = vmatprep.subr.bf16.mxu0 %v2174_v58 }
 0xc34   :  { %v2331_v0 = vpop.eup %2330  ;;  %v1731_v57 = vsel %vm1727_vm4, %v2286_v53, %v2287_v17 }
 0xc35   :  { %v1576_v42 = vmul.f32 %v2331_v0, %v2327_v22  ;;  %v2178_v16 = vpack.c.bf16 %v1731_v57, %v1730_v56  ;;  %v1669_v61 = vpop.permute.xlu0 %1668 }
 0xc37   :  { %2081 = vmatmul.mubr.msk.f32.vlgmr.msra.gmra.mrb[6].mxu0 %vm148_vm1, %v1576_v42 }
 0xc38   :  { %2177 = vmatpush3.bf16.msra.mxu0 %v2174_v58 }
 0xc39   :  { %2179 = vmatprep.subr.bf16.mxu0 %v2178_v16  ;;  %v1677_v41 = vpop.permute.xlu0 %1676 }
 0xc3c   :  { %2181 = vmatpush3.bf16.msra.mxu0 %v2178_v16 }
 0xd0a   :  { %v2082_v59 = vpop.f32.mrb[6].mxu0 }
 0xd0b   :  { %1684 = vrot.lane.b32.xlu0 %v2082_v59, %s2409_s5  ;;  %v1655_v60 = vpop.f32.mrb[7].mxu0 }
 0xd0c   :  { %1682 = vrot.lane.b32.xlu1 %v1655_v60, %s2409_s5 }
 0xd0f   :  { %1819 = vrot.lane.b32.xlu0 %v2545_v33, %s2420_s17  ;;  %v1689_v33 = vsel %vm248_vm2, %v2674_v39, %v1669_v61 }
 0xd10   :  { %1817 = vrot.lane.b32.xlu1 %v2537_v29, %s2420_s17  ;;  %v1691_v29 = vsel %vm148_vm1, %v1689_v33, %v1677_v41 }
 0xd13   :  { %1825 = vrot.lane.b32.xlu0 %v2582_v28, %s2420_s17 }
 0xd14   :  { %1823 = vrot.lane.b32.xlu1 %v2580_v27, %s2420_s17 }
 0xd7d   :  { %v1685_v5 = vpop.permute.xlu0 %1684 }
 0xd7e   :  { %v1683_v7 = vpop.permute.xlu1 %1682  ;;  %v1694_v35 = vsel %vm1692_vm5, %v1691_v29, %v1685_v5 }
 0xd7f   :  { %v1693_v28 = vsel %vm1692_vm5, %v1690_v6, %v1683_v7 }
 0xd80   :  { %2091 = vmatprep.mubr.msk.f32.mxu0 %vm66_vm0, %v1693_v28 }
 0xd81   :  { %2092 = vmatmul.mubr.msk.f32.vlgmr.msra.gmra.mrb[8].mxu0 %vm66_vm0, %v1694_v35  ;;  %v1820_v27 = vpop.permute.xlu0 %1819 }
 0xd82   :  { %v1818_v8 = vpop.permute.xlu1 %1817 }
 0xd85   :  { %v1826_v9 = vpop.permute.xlu0 %1825 }
 0xd86   :  { %v1824_v12 = vpop.permute.xlu1 %1823 }
 0xe54   :  { %v2093_v40 = vpop.f32.mrb[8].mxu0 }
 0xe55   :  { %v1831_v11 = vsel %vm1829_vm6, %v2093_v40, %v1820_v27  ;;  %v1808_v39 = vpop.f32.mrb[9].mxu0 }
 0xe56   :  { %v1834_v45 = vsel %vm1832_vm7, %v1831_v11, %v1826_v9  ;;  %v1830_v49 = vsel %vm1829_vm6, %v1808_v39, %v1818_v8 }
 0xe57   :  { %v1833_v13 = vsel %vm1832_vm7, %v1830_v49, %v1824_v12  ;;  %v1837_v48 = vsel %vm1835_vm8, %v1834_v45, 0.0 }
 0xe58   :  { %v1836_v14 = vsel %vm1835_vm8, %v1833_v13, 0.0  ;;  %1839 = vst [vmem:[#allocation7 + $0x8] sm:$0xff] %v1837_v48 }
 0xe59   :  { %1838 = vst [vmem:[#allocation7] sm:$0xff] %v1836_v14 }
 0xe5a   :  { %2387 = shalt.err (!%p2384_p6)
}
 0xe5b   :  { %s2388_s25 = scalar_lea.hbm %s2772_s2, 256 }
 0xe5c   :  { %p2389_p7 = scmp.ne.s32.totalorder %s2772_s2, %s2388_s25  ;;  %p2392_p8 = scmp.lt.u32.totalorder %s2388_s25, %s2772_s2 }
 0xe5e   :  { %p2394_p9 = pnand %p2392_p8, %p2389_p7 }
 0xe60   :  { %2397 = shalt.err (!%p2394_p9)
}
 0xe61   :  { %1851 = dma.vmem_to_hbm [thread:$0]  %s1846_s21, 256, %s2772_s2, [#allocation4], %s2405_s19, %s2405_s19, %s2406_s20  }
 0xe62   :  { %2402 = dma.done.wait [#allocation4], 256  }
 0xe63   :  { %2403 = vsyncadd [#allocation4], 4294967040 }
 0xe64   :  { %1855 = vsyncpa [#allocation3], 1 }
 0xe65   :  { %1856 = vsyncpa [#allocation6], 1 }
 0xe66   :  { %1857 = vsyncpa [#allocation4], 1 }

</bundles_post_ra>
